<compile_context>
chip_gen: v7x
topology: tpu7x:2x2x1
jax: 0.10.0
libtpu: 0.0.40
codegen_flags: <defaults>
</compile_context>

<pallas_src>
import math

import jax
import jax.numpy as jnp
from jax.experimental import pallas as pl
from jax.experimental.pallas import tpu as pltpu
from jax.scipy.special import erf as _erf_ref


_INV_SQRT2 = 1.0 / math.sqrt(2.0)


def _round_up(x, m):
    return (x + m - 1) // m * m


def _erf_approx(x):
    """erf via Abramowitz & Stegun 7.1.26 (~1.5e-7 max abs err vs exact erf).

    The divide is offloaded to the EUP via the approximate reciprocal and the
    exp is EUP too, so most of the erf cost stays off the 4-wide VALU.
    """
    p = 0.3275911
    a1, a2, a3, a4, a5 = (0.254829592, -0.284496736, 1.421413741,
                          -1.453152027, 1.061405429)
    ax = jnp.abs(x)
    t = pl.reciprocal(1.0 + p * ax, approx=True)
    poly = ((((a5 * t + a4) * t + a3) * t + a2) * t + a1) * t
    e = 1.0 - poly * jnp.exp(-ax * ax)
    return jnp.where(x < 0.0, -e, e)


def _gelu(x):
    # x * 0.5 * (1 + erf(x / sqrt(2)))  -- matches the PyTorch module's gelu.
    return x * (0.5 * (1.0 + _erf_approx(x * _INV_SQRT2)))


def _ffn_kernel(x_ref, w1_ref, b1_ref, w2_ref, b2_ref, o_ref, acc_ref):
    f = pl.program_id(1)

    @pl.when(f == 0)
    def _():
        acc_ref[...] = jnp.zeros_like(acc_ref)

    # fc1 chunk: (tm, H) @ (H, tf) on the MXU, f32 accumulate.
    h = jnp.dot(x_ref[...], w1_ref[...], preferred_element_type=jnp.float32)
    h = h + b1_ref[...]
    g = _gelu(h)
    # fc2 chunk: (tm, tf) @ (tf, H).  The GELU activation never leaves VMEM.
    acc_ref[...] += jnp.dot(g.astype(w2_ref.dtype), w2_ref[...],
                            preferred_element_type=jnp.float32)

    @pl.when(f == pl.num_programs(1) - 1)
    def _():
        o_ref[...] = (acc_ref[...] + b2_ref[...]).astype(o_ref.dtype)


def _vmem_capacity_bytes():
    try:
        return int(pltpu.get_tpu_info().vmem_capacity_bytes)
    except Exception:
        return 64 << 20  # conservative default (v7x per-TC VMEM)


def _choose_tiling(R, hidden, hidden_ff, itemsize, budget, resident_bufs):
    """Pick (tm, tf) so weights + pipelined tiles + live f32 intermediates fit
    inside `budget` bytes of VMEM."""
    full_w = 2 * hidden * hidden_ff * itemsize * resident_bufs
    if full_w <= budget // 2:
        tf = hidden_ff                       # fully resident weights
        w_bytes = full_w
    else:
        # Double-buffered (hidden, tf) + (tf, hidden) weight chunks in budget/2.
        tf = (budget // 2) // (4 * hidden * itemsize)
        tf = max(128, (tf // 128) * 128)
        tf = min(tf, hidden_ff)
        # The ff axis is a reduction: a padded (garbage) last chunk would
        # corrupt the accumulator, so tf must divide hidden_ff exactly.
        while tf > 128 and hidden_ff % tf != 0:
            tf -= 128
        if hidden_ff % tf != 0:
            tf = hidden_ff                   # correctness over footprint
        n_buf_w = 2 if tf < hidden_ff else resident_bufs
        w_bytes = n_buf_w * 2 * hidden * tf * itemsize

    # Per-row bytes: double-buffered x and out tiles, the f32 accumulator
    # scratch, and the two live (tm, tf) f32 intermediates (h and g).
    per_row = 4 * hidden * itemsize + 4 * hidden + 8 * tf
    tm = max(8, (budget - w_bytes) // per_row)
    tm = min(tm, 1024, _round_up(R, 8))
    if tm >= 256:
        tm = (tm // 256) * 256               # align to the MXU row dimension
    else:
        tm = max(8, (tm // 8) * 8)
    return tm, tf


def position_wise_ffn(x, params, *, single_buffer_resident=True):
    """x: (..., hidden).  Returns the same shape/dtype as x."""
    *lead, hidden = x.shape
    x2 = x.reshape(-1, hidden)
    R = x2.shape[0]

    W1 = jnp.asarray(params["fc1_w"])        # (hidden, hidden_ff) = fc1.weight.T
    W2 = jnp.asarray(params["fc2_w"])        # (hidden_ff, hidden) = fc2.weight.T
    hidden_ff = W1.shape[1]
    assert W1.shape == (hidden, hidden_ff)
    assert W2.shape == (hidden_ff, hidden)
    b1 = jnp.asarray(params["fc1_b"]).reshape(1, hidden_ff)
    b2 = jnp.asarray(params["fc2_b"]).reshape(1, hidden)

    itemsize = x.dtype.itemsize
    cap = _vmem_capacity_bytes()
    budget = int(cap * 0.70)                 # tiling budget (compiler headroom)
    vmem_limit = int(cap * 0.85)             # scoped limit > 16/32 MiB defaults

    resident_bufs = 1 if single_buffer_resident else 2
    tm, tf = _choose_tiling(R, hidden, hidden_ff, itemsize, budget,
                            resident_bufs)
    n_row = pl.cdiv(R, tm)
    n_ff = hidden_ff // tf
    resident = n_ff == 1

    # Resident operands (constant index_map) gain nothing from double
    # buffering; Buffered(1) halves their VMEM footprint.
    res_kw = {"pipeline_mode": pl.Buffered(1)} if single_buffer_resident else {}

    def _resident_spec(shape):
        return pl.BlockSpec(shape, lambda i, f: (0, 0), **res_kw)

    if resident:
        w1_spec = _resident_spec((hidden, hidden_ff))
        b1_spec = _resident_spec((1, hidden_ff))
        w2_spec = _resident_spec((hidden_ff, hidden))
    else:
        w1_spec = pl.BlockSpec((hidden, tf), lambda i, f: (0, f))
        b1_spec = pl.BlockSpec((1, tf), lambda i, f: (0, f))
        w2_spec = pl.BlockSpec((tf, hidden), lambda i, f: (f, 0))
    b2_spec = _resident_spec((1, hidden))
    x_spec = pl.BlockSpec((tm, hidden), lambda i, f: (i, 0))
    o_spec = pl.BlockSpec((tm, hidden), lambda i, f: (i, 0))

    cost = pl.CostEstimate(
        flops=int(4 * R * hidden * hidden_ff),
        transcendentals=int(R * hidden_ff),
        bytes_accessed=int(itemsize * 2 * R * hidden
                           + W1.dtype.itemsize * 2 * hidden * hidden_ff
                           + b1.dtype.itemsize * (hidden_ff + hidden)),
    )

    out = pl.pallas_call(
        _ffn_kernel,
        out_shape=jax.ShapeDtypeStruct((R, hidden), x.dtype),
        grid_spec=pltpu.PrefetchScalarGridSpec(
            num_scalar_prefetch=0,
            grid=(n_row, n_ff),
            in_specs=[x_spec, w1_spec, b1_spec, w2_spec, b2_spec],
            out_specs=o_spec,
            scratch_shapes=[pltpu.VMEM((tm, hidden), jnp.float32)],
        ),
        compiler_params=pltpu.CompilerParams(
            dimension_semantics=("parallel", "arbitrary"),
            vmem_limit_bytes=vmem_limit),
        cost_estimate=cost,
    )(x2, W1, b1, W2, b2)

    return out.reshape(*lead, hidden)


def init_params(key, hidden, hidden_ff):
    ks = jax.random.split(key, 4)
    scale = 0.02
    return {
        # PyTorch Linear stores (out, in); keep transposed (in, out) for x @ W.
        "fc1_w": scale * jax.random.normal(ks[0], (hidden, hidden_ff), jnp.float32),
        "fc1_b": scale * jax.random.normal(ks[1], (1, hidden_ff), jnp.float32),
        "fc2_w": scale * jax.random.normal(ks[2], (hidden_ff, hidden), jnp.float32),
        "fc2_b": scale * jax.random.normal(ks[3], (1, hidden), jnp.float32),
    }


def _reference(x, params):
    """Pure-JAX reference mirroring the PyTorch forward (exact erf GELU)."""
    h = x @ params["fc1_w"] + params["fc1_b"][0]
    g = h * 0.5 * (1.0 + _erf_ref(h * _INV_SQRT2))
    return g @ params["fc2_w"] + params["fc2_b"][0]


if __name__ == "__main__":
    # Small config consistent with the module's forward.
    hidden, hidden_ff = 128, 512
    B, S = 2, 8

    key = jax.random.PRNGKey(0)
    kp, kx = jax.random.split(key)
    params = init_params(kp, hidden, hidden_ff)
    x = jax.random.normal(kx, (B, S, hidden), jnp.float32)

    try:
        out = jax.block_until_ready(position_wise_ffn(x, params))
    except Exception:
        # Fallback for JAX versions where pl.Buffered(1) on a resident operand
        # is rejected: identical kernel, default (double) buffering.
        out = jax.block_until_ready(
            position_wise_ffn(x, params, single_buffer_resident=False))

    ref = _reference(x, params)
    assert out.shape == (B, S, hidden)
    assert jnp.allclose(out, ref, atol=2e-3, rtol=2e-3), "mismatch vs reference"

    print("KERNEL_OK")
</pallas_src>

<mosaic_0001>
module attributes {stable_mosaic.version = 11 : i64} {
  func.func @_ffn_kernel(%arg0: i32, %arg1: i32, %arg2: memref<16x128xf32, #tpu.memory_space<vmem>>, %arg3: memref<128x512xf32, #tpu.memory_space<vmem>>, %arg4: memref<1x512xf32, #tpu.memory_space<vmem>>, %arg5: memref<512x128xf32, #tpu.memory_space<vmem>>, %arg6: memref<1x128xf32, #tpu.memory_space<vmem>>, %arg7: memref<16x128xf32, #tpu.memory_space<vmem>>, %arg8: memref<16x128xf32, #tpu.memory_space<vmem>>) attributes {dimension_semantics = [#tpu.dimension_semantics<parallel>, #tpu.dimension_semantics<arbitrary>], iteration_bounds = array<i64: 1, 1>, scalar_prefetch = 0 : i64, scratch_operands = 1 : i64, tpu.core_type = #tpu.core_type<tc>, window_params = [{transform_indices = @transform_0, window_bounds = array<i64: 16, 128>}, {pipeline_mode = #tpu.pipeline_mode<synchronous>, transform_indices = @transform_1, window_bounds = array<i64: 128, 512>}, {pipeline_mode = #tpu.pipeline_mode<synchronous>, transform_indices = @transform_2, window_bounds = array<i64: 1, 512>}, {pipeline_mode = #tpu.pipeline_mode<synchronous>, transform_indices = @transform_3, window_bounds = array<i64: 512, 128>}, {pipeline_mode = #tpu.pipeline_mode<synchronous>, transform_indices = @transform_4, window_bounds = array<i64: 1, 128>}, {transform_indices = @transform_5, window_bounds = array<i64: 16, 128>}]} {
    %c0_i32 = arith.constant 0 : i32
    %0 = arith.cmpi eq, %arg1, %c0_i32 : i32
    %1 = arith.extui %0 : i1 to i32
    %c0_i32_0 = arith.constant 0 : i32
    %2 = arith.cmpi ne, %1, %c0_i32_0 : i32
    scf.if %2 {
      %cst_29 = arith.constant 0.000000e+00 : f32
      %56 = vector.broadcast %cst_29 : f32 to vector<16x128xf32>
      %c0_30 = arith.constant 0 : index
      %c0_31 = arith.constant 0 : index
      %57 = vector.load %arg8[%c0_30, %c0_31] : memref<16x128xf32, #tpu.memory_space<vmem>>, vector<16x128xf32>
      tpu.vector_store %arg8[%c0_30, %c0_31], %56 {strides = array<i32>} : memref<16x128xf32, #tpu.memory_space<vmem>>, vector<16x128xf32>,
    } else {
    }
    %c0 = arith.constant 0 : index
    %c0_1 = arith.constant 0 : index
    %3 = vector.load %arg2[%c0, %c0_1] : memref<16x128xf32, #tpu.memory_space<vmem>>, vector<16x128xf32>
    %c0_2 = arith.constant 0 : index
    %c0_3 = arith.constant 0 : index
    %4 = vector.load %arg3[%c0_2, %c0_3] : memref<128x512xf32, #tpu.memory_space<vmem>>, vector<128x512xf32>
    %cst = arith.constant dense<0.000000e+00> : vector<16x512xf32>
    %5 = tpu.matmul %3, %4, %cst {dimension_numbers = #tpu.dot_dimension_numbers<[1], [0], [0], [1], [0, 0, 1, 1], [], []>} : vector<16x128xf32>, vector<128x512xf32>, vector<16x512xf32> -> vector<16x512xf32>
    %c0_4 = arith.constant 0 : index
    %c0_5 = arith.constant 0 : index
    %6 = vector.load %arg4[%c0_4, %c0_5] : memref<1x512xf32, #tpu.memory_space<vmem>>, vector<1x512xf32>
    %7 = vector.broadcast %6 : vector<1x512xf32> to vector<16x512xf32>
    %8 = arith.addf %5, %7 : vector<16x512xf32>
    %cst_6 = arith.constant 0.707106769 : f32
    %9 = vector.broadcast %cst_6 : f32 to vector<16x512xf32>
    %10 = arith.mulf %8, %9 : vector<16x512xf32>
    %11 = math.absf %10 : vector<16x512xf32>
    %cst_7 = arith.constant 0.327591091 : f32
    %12 = vector.broadcast %cst_7 : f32 to vector<16x512xf32>
    %13 = arith.mulf %12, %11 : vector<16x512xf32>
    %cst_8 = arith.constant 1.000000e+00 : f32
    %14 = vector.broadcast %cst_8 : f32 to vector<16x512xf32>
    %15 = arith.addf %14, %13 : vector<16x512xf32>
    %16 = tpu.reciprocal %15 {approx = true} : vector<16x512xf32> -> vector<16x512xf32>
    %cst_9 = arith.constant 1.06140542 : f32
    %17 = vector.broadcast %cst_9 : f32 to vector<16x512xf32>
    %18 = arith.mulf %17, %16 : vector<16x512xf32>
    %cst_10 = arith.constant -1.45315206 : f32
    %19 = vector.broadcast %cst_10 : f32 to vector<16x512xf32>
    %20 = arith.addf %18, %19 : vector<16x512xf32>
    %21 = arith.mulf %20, %16 : vector<16x512xf32>
    %cst_11 = arith.constant 1.42141378 : f32
    %22 = vector.broadcast %cst_11 : f32 to vector<16x512xf32>
    %23 = arith.addf %21, %22 : vector<16x512xf32>
    %24 = arith.mulf %23, %16 : vector<16x512xf32>
    %cst_12 = arith.constant -0.284496725 : f32
    %25 = vector.broadcast %cst_12 : f32 to vector<16x512xf32>
    %26 = arith.addf %24, %25 : vector<16x512xf32>
    %27 = arith.mulf %26, %16 : vector<16x512xf32>
    %cst_13 = arith.constant 0.254829586 : f32
    %28 = vector.broadcast %cst_13 : f32 to vector<16x512xf32>
    %29 = arith.addf %27, %28 : vector<16x512xf32>
    %30 = arith.mulf %29, %16 : vector<16x512xf32>
    %cst_14 = arith.constant 0.000000e+00 : f32
    %31 = vector.broadcast %cst_14 : f32 to vector<16x512xf32>
    %32 = arith.subf %31, %11 : vector<16x512xf32>
    %33 = arith.mulf %32, %11 : vector<16x512xf32>
    %34 = math.exp %33 : vector<16x512xf32>
    %35 = arith.mulf %30, %34 : vector<16x512xf32>
    %cst_15 = arith.constant 1.000000e+00 : f32
    %36 = vector.broadcast %cst_15 : f32 to vector<16x512xf32>
    %37 = arith.subf %36, %35 : vector<16x512xf32>
    %cst_16 = arith.constant 0.000000e+00 : f32
    %38 = vector.broadcast %cst_16 : f32 to vector<16x512xf32>
    %39 = arith.cmpf olt, %10, %38 : vector<16x512xf32>
    %cst_17 = arith.constant 0.000000e+00 : f32
    %40 = vector.broadcast %cst_17 : f32 to vector<16x512xf32>
    %41 = arith.subf %40, %37 : vector<16x512xf32>
    %42 = arith.select %39, %41, %37 : vector<16x512xi1>, vector<16x512xf32>
    %cst_18 = arith.constant 1.000000e+00 : f32
    %43 = vector.broadcast %cst_18 : f32 to vector<16x512xf32>
    %44 = arith.addf %43, %42 : vector<16x512xf32>
    %cst_19 = arith.constant 5.000000e-01 : f32
    %45 = vector.broadcast %cst_19 : f32 to vector<16x512xf32>
    %46 = arith.mulf %45, %44 : vector<16x512xf32>
    %47 = arith.mulf %8, %46 : vector<16x512xf32>
    %c0_20 = arith.constant 0 : index
    %c0_21 = arith.constant 0 : index
    %48 = vector.load %arg8[%c0_20, %c0_21] : memref<16x128xf32, #tpu.memory_space<vmem>>, vector<16x128xf32>
    %c0_22 = arith.constant 0 : index
    %c0_23 = arith.constant 0 : index
    %49 = vector.load %arg5[%c0_22, %c0_23] : memref<512x128xf32, #tpu.memory_space<vmem>>, vector<512x128xf32>
    %cst_24 = arith.constant dense<0.000000e+00> : vector<16x128xf32>
    %50 = tpu.matmul %47, %49, %cst_24 {dimension_numbers = #tpu.dot_dimension_numbers<[1], [0], [0], [1], [0, 0, 1, 1], [], []>} : vector<16x512xf32>, vector<512x128xf32>, vector<16x128xf32> -> vector<16x128xf32>
    %51 = arith.addf %48, %50 : vector<16x128xf32>
    %c0_25 = arith.constant 0 : index
    %c0_26 = arith.constant 0 : index
    %52 = vector.load %arg8[%c0_25, %c0_26] : memref<16x128xf32, #tpu.memory_space<vmem>>, vector<16x128xf32>
    tpu.vector_store %arg8[%c0_25, %c0_26], %51 {strides = array<i32>} : memref<16x128xf32, #tpu.memory_space<vmem>>, vector<16x128xf32>,
    %c0_i32_27 = arith.constant 0 : i32
    %53 = arith.cmpi eq, %arg1, %c0_i32_27 : i32
    %54 = arith.extui %53 : i1 to i32
    %c0_i32_28 = arith.constant 0 : i32
    %55 = arith.cmpi ne, %54, %c0_i32_28 : i32
    scf.if %55 {
      %c0_29 = arith.constant 0 : index
      %c0_30 = arith.constant 0 : index
      %56 = vector.load %arg8[%c0_29, %c0_30] : memref<16x128xf32, #tpu.memory_space<vmem>>, vector<16x128xf32>
      %c0_31 = arith.constant 0 : index
      %c0_32 = arith.constant 0 : index
      %57 = vector.load %arg6[%c0_31, %c0_32] : memref<1x128xf32, #tpu.memory_space<vmem>>, vector<1x128xf32>
      %58 = vector.broadcast %57 : vector<1x128xf32> to vector<16x128xf32>
      %59 = arith.addf %56, %58 : vector<16x128xf32>
      %c0_33 = arith.constant 0 : index
      %c0_34 = arith.constant 0 : index
      %60 = vector.load %arg7[%c0_33, %c0_34] : memref<16x128xf32, #tpu.memory_space<vmem>>, vector<16x128xf32>
      tpu.vector_store %arg7[%c0_33, %c0_34], %59 {strides = array<i32>} : memref<16x128xf32, #tpu.memory_space<vmem>>, vector<16x128xf32>,
    } else {
    }
    return
  }
  func.func @transform_0(%arg0: i32, %arg1: i32) -> (i32, i32) {
    %c0_i32 = arith.constant 0 : i32
    %c0_i32_0 = arith.constant 0 : i32
    return %arg0, %c0_i32 : i32, i32
  }
  func.func @transform_1(%arg0: i32, %arg1: i32) -> (i32, i32) {
    %c0_i32 = arith.constant 0 : i32
    %c0_i32_0 = arith.constant 0 : i32
    %c0_i32_1 = arith.constant 0 : i32
    return %c0_i32, %c0_i32_0 : i32, i32
  }
  func.func @transform_2(%arg0: i32, %arg1: i32) -> (i32, i32) {
    %c0_i32 = arith.constant 0 : i32
    %c0_i32_0 = arith.constant 0 : i32
    %c0_i32_1 = arith.constant 0 : i32
    return %c0_i32, %c0_i32_0 : i32, i32
  }
  func.func @transform_3(%arg0: i32, %arg1: i32) -> (i32, i32) {
    %c0_i32 = arith.constant 0 : i32
    %c0_i32_0 = arith.constant 0 : i32
    %c0_i32_1 = arith.constant 0 : i32
    return %c0_i32, %c0_i32_0 : i32, i32
  }
  func.func @transform_4(%arg0: i32, %arg1: i32) -> (i32, i32) {
    %c0_i32 = arith.constant 0 : i32
    %c0_i32_0 = arith.constant 0 : i32
    %c0_i32_1 = arith.constant 0 : i32
    return %c0_i32, %c0_i32_0 : i32, i32
  }
  func.func @transform_5(%arg0: i32, %arg1: i32) -> (i32, i32) {
    %c0_i32 = arith.constant 0 : i32
    %c0_i32_0 = arith.constant 0 : i32
    return %arg0, %c0_i32 : i32, i32
  }
}

module attributes {stable_mosaic.version = 11 : i64} {
  func.func @_ffn_kernel(%arg0: i32, %arg1: i32, %arg2: memref<16x128xf32, #tpu.memory_space<vmem>>, %arg3: memref<128x512xf32, #tpu.memory_space<vmem>>, %arg4: memref<1x512xf32, #tpu.memory_space<vmem>>, %arg5: memref<512x128xf32, #tpu.memory_space<vmem>>, %arg6: memref<1x128xf32, #tpu.memory_space<vmem>>, %arg7: memref<16x128xf32, #tpu.memory_space<vmem>>, %arg8: memref<16x128xf32, #tpu.memory_space<vmem>>) attributes {dimension_semantics = [#tpu.dimension_semantics<parallel>, #tpu.dimension_semantics<arbitrary>], iteration_bounds = array<i64: 1, 1>, scalar_prefetch = 0 : i64, scratch_operands = 1 : i64, tpu.core_type = #tpu.core_type<tc>, window_params = [{transform_indices = @transform_0, window_bounds = array<i64: 16, 128>}, {pipeline_mode = #tpu.pipeline_mode<synchronous>, transform_indices = @transform_1, window_bounds = array<i64: 128, 512>}, {pipeline_mode = #tpu.pipeline_mode<synchronous>, transform_indices = @transform_2, window_bounds = array<i64: 1, 512>}, {pipeline_mode = #tpu.pipeline_mode<synchronous>, transform_indices = @transform_3, window_bounds = array<i64: 512, 128>}, {pipeline_mode = #tpu.pipeline_mode<synchronous>, transform_indices = @transform_4, window_bounds = array<i64: 1, 128>}, {transform_indices = @transform_5, window_bounds = array<i64: 16, 128>}]} {
    %c0_i32 = arith.constant 0 : i32
    %0 = arith.cmpi eq, %arg1, %c0_i32 : i32
    %1 = arith.extui %0 : i1 to i32
    %c0_i32_0 = arith.constant 0 : i32
    %2 = arith.cmpi ne, %1, %c0_i32_0 : i32
    scf.if %2 {
      %cst_29 = arith.constant 0.000000e+00 : f32
      %56 = vector.broadcast %cst_29 : f32 to vector<16x128xf32>
      %c0_30 = arith.constant 0 : index
      %c0_31 = arith.constant 0 : index
      %57 = vector.load %arg8[%c0_30, %c0_31] : memref<16x128xf32, #tpu.memory_space<vmem>>, vector<16x128xf32>
      tpu.vector_store %arg8[%c0_30, %c0_31], %56 {strides = array<i32>} : memref<16x128xf32, #tpu.memory_space<vmem>>, vector<16x128xf32>,
    } else {
    }
    %c0 = arith.constant 0 : index
    %c0_1 = arith.constant 0 : index
    %3 = vector.load %arg2[%c0, %c0_1] : memref<16x128xf32, #tpu.memory_space<vmem>>, vector<16x128xf32>
    %c0_2 = arith.constant 0 : index
    %c0_3 = arith.constant 0 : index
    %4 = vector.load %arg3[%c0_2, %c0_3] : memref<128x512xf32, #tpu.memory_space<vmem>>, vector<128x512xf32>
    %cst = arith.constant dense<0.000000e+00> : vector<16x512xf32>
    %5 = tpu.matmul %3, %4, %cst {dimension_numbers = #tpu.dot_dimension_numbers<[1], [0], [0], [1], [0, 0, 1, 1], [], []>} : vector<16x128xf32>, vector<128x512xf32>, vector<16x512xf32> -> vector<16x512xf32>
    %c0_4 = arith.constant 0 : index
    %c0_5 = arith.constant 0 : index
    %6 = vector.load %arg4[%c0_4, %c0_5] : memref<1x512xf32, #tpu.memory_space<vmem>>, vector<1x512xf32>
    %7 = vector.broadcast %6 : vector<1x512xf32> to vector<16x512xf32>
    %8 = arith.addf %5, %7 : vector<16x512xf32>
    %cst_6 = arith.constant 0.707106769 : f32
    %9 = vector.broadcast %cst_6 : f32 to vector<16x512xf32>
    %10 = arith.mulf %8, %9 : vector<16x512xf32>
    %11 = math.absf %10 : vector<16x512xf32>
    %cst_7 = arith.constant 0.327591091 : f32
    %12 = vector.broadcast %cst_7 : f32 to vector<16x512xf32>
    %13 = arith.mulf %12, %11 : vector<16x512xf32>
    %cst_8 = arith.constant 1.000000e+00 : f32
    %14 = vector.broadcast %cst_8 : f32 to vector<16x512xf32>
    %15 = arith.addf %14, %13 : vector<16x512xf32>
    %16 = tpu.reciprocal %15 {approx = true} : vector<16x512xf32> -> vector<16x512xf32>
    %cst_9 = arith.constant 1.06140542 : f32
    %17 = vector.broadcast %cst_9 : f32 to vector<16x512xf32>
    %18 = arith.mulf %17, %16 : vector<16x512xf32>
    %cst_10 = arith.constant -1.45315206 : f32
    %19 = vector.broadcast %cst_10 : f32 to vector<16x512xf32>
    %20 = arith.addf %18, %19 : vector<16x512xf32>
    %21 = arith.mulf %20, %16 : vector<16x512xf32>
    %cst_11 = arith.constant 1.42141378 : f32
    %22 = vector.broadcast %cst_11 : f32 to vector<16x512xf32>
    %23 = arith.addf %21, %22 : vector<16x512xf32>
    %24 = arith.mulf %23, %16 : vector<16x512xf32>
    %cst_12 = arith.constant -0.284496725 : f32
    %25 = vector.broadcast %cst_12 : f32 to vector<16x512xf32>
    %26 = arith.addf %24, %25 : vector<16x512xf32>
    %27 = arith.mulf %26, %16 : vector<16x512xf32>
    %cst_13 = arith.constant 0.254829586 : f32
    %28 = vector.broadcast %cst_13 : f32 to vector<16x512xf32>
    %29 = arith.addf %27, %28 : vector<16x512xf32>
    %30 = arith.mulf %29, %16 : vector<16x512xf32>
    %cst_14 = arith.constant 0.000000e+00 : f32
    %31 = vector.broadcast %cst_14 : f32 to vector<16x512xf32>
    %32 = arith.subf %31, %11 : vector<16x512xf32>
    %33 = arith.mulf %32, %11 : vector<16x512xf32>
    %34 = math.exp %33 : vector<16x512xf32>
    %35 = arith.mulf %30, %34 : vector<16x512xf32>
    %cst_15 = arith.constant 1.000000e+00 : f32
    %36 = vector.broadcast %cst_15 : f32 to vector<16x512xf32>
    %37 = arith.subf %36, %35 : vector<16x512xf32>
    %cst_16 = arith.constant 0.000000e+00 : f32
    %38 = vector.broadcast %cst_16 : f32 to vector<16x512xf32>
    %39 = arith.cmpf olt, %10, %38 : vector<16x512xf32>
    %cst_17 = arith.constant 0.000000e+00 : f32
    %40 = vector.broadcast %cst_17 : f32 to vector<16x512xf32>
    %41 = arith.subf %40, %37 : vector<16x512xf32>
    %42 = arith.select %39, %41, %37 : vector<16x512xi1>, vector<16x512xf32>
    %cst_18 = arith.constant 1.000000e+00 : f32
    %43 = vector.broadcast %cst_18 : f32 to vector<16x512xf32>
    %44 = arith.addf %43, %42 : vector<16x512xf32>
    %cst_19 = arith.constant 5.000000e-01 : f32
    %45 = vector.broadcast %cst_19 : f32 to vector<16x512xf32>
    %46 = arith.mulf %45, %44 : vector<16x512xf32>
    %47 = arith.mulf %8, %46 : vector<16x512xf32>
    %c0_20 = arith.constant 0 : index
    %c0_21 = arith.constant 0 : index
    %48 = vector.load %arg8[%c0_20, %c0_21] : memref<16x128xf32, #tpu.memory_space<vmem>>, vector<16x128xf32>
    %c0_22 = arith.constant 0 : index
    %c0_23 = arith.constant 0 : index
    %49 = vector.load %arg5[%c0_22, %c0_23] : memref<512x128xf32, #tpu.memory_space<vmem>>, vector<512x128xf32>
    %cst_24 = arith.constant dense<0.000000e+00> : vector<16x128xf32>
    %50 = tpu.matmul %47, %49, %cst_24 {dimension_numbers = #tpu.dot_dimension_numbers<[1], [0], [0], [1], [0, 0, 1, 1], [], []>} : vector<16x512xf32>, vector<512x128xf32>, vector<16x128xf32> -> vector<16x128xf32>
    %51 = arith.addf %48, %50 : vector<16x128xf32>
    %c0_25 = arith.constant 0 : index
    %c0_26 = arith.constant 0 : index
    %52 = vector.load %arg8[%c0_25, %c0_26] : memref<16x128xf32, #tpu.memory_space<vmem>>, vector<16x128xf32>
    tpu.vector_store %arg8[%c0_25, %c0_26], %51 {strides = array<i32>} : memref<16x128xf32, #tpu.memory_space<vmem>>, vector<16x128xf32>,
    %c0_i32_27 = arith.constant 0 : i32
    %53 = arith.cmpi eq, %arg1, %c0_i32_27 : i32
    %54 = arith.extui %53 : i1 to i32
    %c0_i32_28 = arith.constant 0 : i32
    %55 = arith.cmpi ne, %54, %c0_i32_28 : i32
    scf.if %55 {
      %c0_29 = arith.constant 0 : index
      %c0_30 = arith.constant 0 : index
      %56 = vector.load %arg8[%c0_29, %c0_30] : memref<16x128xf32, #tpu.memory_space<vmem>>, vector<16x128xf32>
      %c0_31 = arith.constant 0 : index
      %c0_32 = arith.constant 0 : index
      %57 = vector.load %arg6[%c0_31, %c0_32] : memref<1x128xf32, #tpu.memory_space<vmem>>, vector<1x128xf32>
      %58 = vector.broadcast %57 : vector<1x128xf32> to vector<16x128xf32>
      %59 = arith.addf %56, %58 : vector<16x128xf32>
      %c0_33 = arith.constant 0 : index
      %c0_34 = arith.constant 0 : index
      %60 = vector.load %arg7[%c0_33, %c0_34] : memref<16x128xf32, #tpu.memory_space<vmem>>, vector<16x128xf32>
      tpu.vector_store %arg7[%c0_33, %c0_34], %59 {strides = array<i32>} : memref<16x128xf32, #tpu.memory_space<vmem>>, vector<16x128xf32>,
    } else {
    }
    return
  }
  func.func @transform_0(%arg0: i32, %arg1: i32) -> (i32, i32) {
    %c0_i32 = arith.constant 0 : i32
    %c0_i32_0 = arith.constant 0 : i32
    return %arg0, %c0_i32 : i32, i32
  }
  func.func @transform_1(%arg0: i32, %arg1: i32) -> (i32, i32) {
    %c0_i32 = arith.constant 0 : i32
    %c0_i32_0 = arith.constant 0 : i32
    %c0_i32_1 = arith.constant 0 : i32
    return %c0_i32, %c0_i32_0 : i32, i32
  }
  func.func @transform_2(%arg0: i32, %arg1: i32) -> (i32, i32) {
    %c0_i32 = arith.constant 0 : i32
    %c0_i32_0 = arith.constant 0 : i32
    %c0_i32_1 = arith.constant 0 : i32
    return %c0_i32, %c0_i32_0 : i32, i32
  }
  func.func @transform_3(%arg0: i32, %arg1: i32) -> (i32, i32) {
    %c0_i32 = arith.constant 0 : i32
    %c0_i32_0 = arith.constant 0 : i32
    %c0_i32_1 = arith.constant 0 : i32
    return %c0_i32, %c0_i32_0 : i32, i32
  }
  func.func @transform_4(%arg0: i32, %arg1: i32) -> (i32, i32) {
    %c0_i32 = arith.constant 0 : i32
    %c0_i32_0 = arith.constant 0 : i32
    %c0_i32_1 = arith.constant 0 : i32
    return %c0_i32, %c0_i32_0 : i32, i32
  }
  func.func @transform_5(%arg0: i32, %arg1: i32) -> (i32, i32) {
    %c0_i32 = arith.constant 0 : i32
    %c0_i32_0 = arith.constant 0 : i32
    return %arg0, %c0_i32 : i32, i32
  }
}

</mosaic_0001>

<bundles_post_ra>
// kernel: tpu_custom_call.1
= control target key start
LH: loop header
LB: loop body
LE: loop exit
PB: predicated region body
PF: predicated region fallthrough
CT: control target
= control target key end

     0   :  { %10 = vsyncpa [#allocation4], 0  ;;  %s1349_s0 = inlined_call_operand.hbm [shape: f32[16,128], index: 0, kind: input, shape index: {}]   ;;  %s1350_s1 = inlined_call_operand.hbm [shape: f32[128,512], index: 1, kind: input, shape index: {}]   ;;  %s1351_s2 = inlined_call_operand.vmem [shape: f32[1,512], index: 2, kind: input, shape index: {}]   ;;  %s1352_s3 = inlined_call_operand.hbm [shape: f32[512,128], index: 3, kind: input, shape index: {}]   ;;  %s1353_s4 = inlined_call_operand.vmem [shape: f32[1,128], index: 4, kind: input, shape index: {}]   ;;  %s1354_s5 = inlined_call_operand.hbm [shape: f32[16,128], index: 5, kind: output, shape index: {}]  }
   0x1   :  { %11 = vsyncpa [#allocation7], 0 }
   0x2   :  { %12 = vsyncpa [#allocation5], 0  ;;  %s1112_s18 = smov [#allocation6]   ;;  %s1018_s22 = scalar_lea.hbm %s1350_s1, 8192 }
   0x3   :  { %s30_s19 = sshll.u32 %s1112_s18, 4  ;;  %p1019_p0 = scmp.ne.s32.totalorder %s1350_s1, %s1018_s22  ;;  %s31_s19 = int_to_ptr.vmem [resolvable:$true] %s30_s19 }
   0x4   :  { %p1022_p1 = scmp.lt.u32.totalorder %s1018_s22, %s1350_s1 }
   0x6   :  { %p1024_p2 = pnand %p1022_p1, %p1019_p0 }
   0x8   :  { %1027 = shalt.err (!%p1024_p2)
}
   0x9   :  { %s1028_s27 = scalar_lea.vmem %s31_s19, 8192  ;;  %p1033_p4 = scmp.lt.s32.totalorder %s31_s19, %s31_s19 }
   0xa   :  { %p1029_p3 = scmp.ne.s32.totalorder %s31_s19, %s1028_s27  ;;  %p1034_p5 = scmp.lt.s32.totalorder %s1028_s27, %s1028_s27 }
   0xc   :  { %p1035_p6 = por %p1034_p5, %p1033_p4 }
   0xe   :  { %p1036_p7 = pnand %p1035_p6, %p1029_p3 }
  0x10   :  { %1039 = shalt.err (!%p1036_p7)
}
  0x11   :  { %s1113_s28 = smov 512   ;;  %s1114_s29 = smov 32  }
  0x12   :  { %36 = dma.hbm_to_vmem [thread:$0]  %s1350_s1, 8192, %s31_s19, [#allocation7], %s1113_s28, %s1113_s28, %s1114_s29  }
  0x13   :  { %s1115_s7 = smov [#allocation3]   ;;  %s1040_s11 = scalar_lea.hbm %s1349_s0, 256 }
  0x14   :  { %s18_s8 = sshll.u32 %s1115_s7, 4  ;;  %p1041_p8 = scmp.ne.s32.totalorder %s1349_s0, %s1040_s11  ;;  %s19_s8 = int_to_ptr.vmem [resolvable:$true] %s18_s8 }
  0x15   :  { %p1044_p9 = scmp.lt.u32.totalorder %s1040_s11, %s1349_s0 }
  0x17   :  { %p1046_p10 = pnand %p1044_p9, %p1041_p8 }
  0x19   :  { %1049 = shalt.err (!%p1046_p10)
}
  0x1a   :  { %s1050_s16 = scalar_lea.vmem %s19_s8, 256  ;;  %p1055_p12 = scmp.lt.s32.totalorder %s19_s8, %s19_s8 }
  0x1b   :  { %p1051_p11 = scmp.ne.s32.totalorder %s19_s8, %s1050_s16  ;;  %p1056_p13 = scmp.lt.s32.totalorder %s1050_s16, %s1050_s16 }
  0x1d   :  { %p1057_p0 = por %p1056_p13, %p1055_p12 }
  0x1f   :  { %p1058_p1 = pnand %p1057_p0, %p1051_p11 }
  0x21   :  { %1061 = shalt.err (!%p1058_p1)
}
  0x22   :  { %s1116_s1 = smov 128   ;;  %s1117_s17 = smov 8  }
  0x23   :  { %24 = dma.hbm_to_vmem [thread:$0]  %s1349_s0, 256, %s19_s8, [#allocation4], %s1116_s1, %s1116_s1, %s1117_s17  }
  0x24   :  { %s1118_s20 = smov [#allocation8]   ;;  %s1062_s24 = scalar_lea.hbm %s1352_s3, 8192 }
  0x25   :  { %s44_s21 = sshll.u32 %s1118_s20, 4  ;;  %p1063_p2 = scmp.ne.s32.totalorder %s1352_s3, %s1062_s24  ;;  %s45_s21 = int_to_ptr.vmem [resolvable:$true] %s44_s21 }
  0x26   :  { %p1066_p3 = scmp.lt.u32.totalorder %s1062_s24, %s1352_s3 }
  0x28   :  { %p1068_p4 = pnand %p1066_p3, %p1063_p2 }
  0x2a   :  { %1071 = shalt.err (!%p1068_p4)
}
  0x2b   :  { %s1072_s29 = scalar_lea.vmem %s45_s21, 8192  ;;  %p1077_p6 = scmp.lt.s32.totalorder %s45_s21, %s45_s21 }
  0x2c   :  { %p1073_p5 = scmp.ne.s32.totalorder %s45_s21, %s1072_s29  ;;  %p1078_p7 = scmp.lt.s32.totalorder %s1072_s29, %s1072_s29 }
  0x2e   :  { %p1079_p8 = por %p1078_p7, %p1077_p6 }
  0x30   :  { %p1080_p9 = pnand %p1079_p8, %p1073_p5 }
  0x32   :  { %1083 = shalt.err (!%p1080_p9)
}
  0x33   :  { %50 = dma.hbm_to_vmem [thread:$0]  %s1352_s3, 8192, %s45_s21, [#allocation7], %s1116_s1, %s1116_s1, %s1117_s17  }
  0x34   :  { %1106 = dma.done.wait [#allocation4], 256  }
  0x35   :  { %1107 = vsyncadd [#allocation4], 4294967040 }
  0x36   :  { %1108 = dma.done.wait [#allocation7], 16384  }
  0x37   :  { %1109 = vsyncadd [#allocation7], 4294950912  ;;  %v1119_v0 = vmov 0.0   ;;  %v71_v1 = vld [vmem:[#allocation6 + $0x8] sm:$0xff]  ;;  %v73_v3 = vld [vmem:[#allocation6 + $0x18] sm:$0xff]  ;;  %s1120_s8 = smov [#allocation9]  }
  0x38   :  { %220 = vmatprep.mubr.f32.mxu0 %v1119_v0  ;;  %297 = vmatprep.mubr.f32.mxu1 %v1119_v0  ;;  %v75_v2 = vld [vmem:[#allocation6 + $0x28] sm:$0xff]  ;;  %v77_v5 = vld [vmem:[#allocation6 + $0x38] sm:$0xff]  ;;  %v70_v6 = vld [vmem:[#allocation6] sm:$0xff]  ;;  %s759_s9 = sshll.u32 %s1120_s8, 4  ;;  %s760_s9 = int_to_ptr.vmem [resolvable:$true] %s759_s9 }
  0x39   :  { %v849_v4 = vpack.c.bf16 %v75_v2, %v71_v1  ;;  %v74_v7 = vld [vmem:[#allocation6 + $0x20] sm:$0xff]  ;;  %v881_v8 = vpack.c.bf16 %v77_v5, %v73_v3  ;;  %v72_v10 = vld [vmem:[#allocation6 + $0x10] sm:$0xff]  ;;  %v79_v12 = vld [vmem:[#allocation6 + $0x48] sm:$0xff]  ;;  %s1084_s10 = scalar_lea.vmem %s760_s9, 256  ;;  %p1089_p11 = scmp.lt.s32.totalorder %s760_s9, %s760_s9 }
  0x3a   :  { %v851_v9 = vpack.c.bf16 %v74_v7, %v70_v6  ;;  %v76_v11 = vld [vmem:[#allocation6 + $0x30] sm:$0xff]  ;;  %v83_v14 = vld [vmem:[#allocation6 + $0x68] sm:$0xff]  ;;  %v81_v15 = vld [vmem:[#allocation6 + $0x58] sm:$0xff]  ;;  %p1085_p10 = scmp.ne.s32.totalorder %s760_s9, %s1084_s10  ;;  %p1090_p12 = scmp.lt.s32.totalorder %s1084_s10, %s1084_s10 }
  0x3b   :  { %850 = vmatprep.subr.bf16.mxu0 %v849_v4  ;;  %v883_v13 = vpack.c.bf16 %v76_v11, %v72_v10  ;;  %v85_v16 = vld [vmem:[#allocation6 + $0x78] sm:$0xff]  ;;  %882 = vmatprep.subr.bf16.mxu1 %v881_v8  ;;  %v853_v17 = vpack.c.bf16 %v83_v14, %v79_v12  ;;  %v78_v19 = vld [vmem:[#allocation6 + $0x40] sm:$0xff]  ;;  %v80_v21 = vld [vmem:[#allocation6 + $0x50] sm:$0xff] }
  0x3c   :  { %852 = vmatpush1.bf16.msra.mxu0 %v851_v9  ;;  %v885_v18 = vpack.c.bf16 %v85_v16, %v81_v15  ;;  %v82_v20 = vld [vmem:[#allocation6 + $0x60] sm:$0xff]  ;;  %v84_v23 = vld [vmem:[#allocation6 + $0x70] sm:$0xff]  ;;  %v87_v24 = vld [vmem:[#allocation6 + $0x88] sm:$0xff]  ;;  %p1091_p13 = por %p1090_p12, %p1089_p11 }
  0x3d   :  { %884 = vmatpush1.bf16.msra.mxu1 %v883_v13  ;;  %v855_v22 = vpack.c.bf16 %v82_v20, %v78_v19  ;;  %v91_v25 = vld [vmem:[#allocation6 + $0xa8] sm:$0xff]  ;;  %854 = vmatprep.subr.bf16.mxu0 %v853_v17  ;;  %v887_v26 = vpack.c.bf16 %v84_v23, %v80_v21  ;;  %v89_v28 = vld [vmem:[#allocation6 + $0x98] sm:$0xff]  ;;  %v86_v30 = vld [vmem:[#allocation6 + $0x80] sm:$0xff] }
  0x3e   :  { %886 = vmatprep.subr.bf16.mxu1 %v885_v18  ;;  %v857_v27 = vpack.c.bf16 %v91_v25, %v87_v24  ;;  %v93_v29 = vld [vmem:[#allocation6 + $0xb8] sm:$0xff]  ;;  %v90_v32 = vld [vmem:[#allocation6 + $0xa0] sm:$0xff]  ;;  %v88_v33 = vld [vmem:[#allocation6 + $0x90] sm:$0xff]  ;;  %p1092_p0 = pnand %p1091_p13, %p1085_p10 }
  0x3f   :  { %v889_v31 = vpack.c.bf16 %v93_v29, %v89_v28  ;;  %v92_v34 = vld [vmem:[#allocation6 + $0xb0] sm:$0xff]  ;;  %v859_v35 = vpack.c.bf16 %v90_v32, %v86_v30  ;;  %v95_v36 = vld [vmem:[#allocation6 + $0xc8] sm:$0xff]  ;;  %v97_v38 = vld [vmem:[#allocation6 + $0xd8] sm:$0xff] }
  0x40   :  { %856 = vmatpush1.bf16.msra.mxu0 %v855_v22  ;;  %v99_v37 = vld [vmem:[#allocation6 + $0xe8] sm:$0xff]  ;;  %v891_v39 = vpack.c.bf16 %v92_v34, %v88_v33  ;;  %v101_v41 = vld [vmem:[#allocation6 + $0xf8] sm:$0xff]  ;;  %v94_v42 = vld [vmem:[#allocation6 + $0xc0] sm:$0xff] }
  0x41   :  { %888 = vmatpush1.bf16.msra.mxu1 %v887_v26  ;;  %858 = vmatprep.subr.bf16.mxu0 %v857_v27  ;;  %v861_v40 = vpack.c.bf16 %v99_v37, %v95_v36  ;;  %v98_v43 = vld [vmem:[#allocation6 + $0xe0] sm:$0xff]  ;;  %v893_v44 = vpack.c.bf16 %v101_v41, %v97_v38  ;;  %v96_v45 = vld [vmem:[#allocation6 + $0xd0] sm:$0xff]  ;;  %v103_v47 = vld [vmem:[#allocation6 + $0x108] sm:$0xff] }
  0x42   :  { %890 = vmatprep.subr.bf16.mxu1 %v889_v31  ;;  %v100_v46 = vld [vmem:[#allocation6 + $0xf0] sm:$0xff]  ;;  %v107_v48 = vld [vmem:[#allocation6 + $0x128] sm:$0xff]  ;;  %v105_v49 = vld [vmem:[#allocation6 + $0x118] sm:$0xff]  ;;  %v863_v51 = vpack.c.bf16 %v98_v43, %v94_v42 }
  0x43   :  { %v109_v50 = vld [vmem:[#allocation6 + $0x138] sm:$0xff]  ;;  %v895_v52 = vpack.c.bf16 %v100_v46, %v96_v45  ;;  %v865_v53 = vpack.c.bf16 %v107_v48, %v103_v47  ;;  %v102_v54 = vld [vmem:[#allocation6 + $0x100] sm:$0xff]  ;;  %v104_v56 = vld [vmem:[#allocation6 + $0x110] sm:$0xff] }
  0x44   :  { %860 = vmatpush1.bf16.msra.mxu0 %v859_v35  ;;  %v106_v55 = vld [vmem:[#allocation6 + $0x120] sm:$0xff]  ;;  %v897_v57 = vpack.c.bf16 %v109_v50, %v105_v49  ;;  %v108_v58 = vld [vmem:[#allocation6 + $0x130] sm:$0xff]  ;;  %v111_v59 = vld [vmem:[#allocation6 + $0x148] sm:$0xff] }
  0x45   :  { %892 = vmatpush1.bf16.msra.mxu1 %v891_v39  ;;  %862 = vmatprep.subr.bf16.mxu0 %v861_v40  ;;  %v115_v60 = vld [vmem:[#allocation6 + $0x168] sm:$0xff]  ;;  %v113_v61 = vld [vmem:[#allocation6 + $0x158] sm:$0xff]  ;;  %v867_v63 = vpack.c.bf16 %v106_v55, %v102_v54  ;;  %v899_v1 = vpack.c.bf16 %v108_v58, %v104_v56  ;;  %v110_v3 = vld [vmem:[#allocation6 + $0x140] sm:$0xff] }
  0x46   :  { %894 = vmatprep.subr.bf16.mxu1 %v893_v44  ;;  %v117_v62 = vld [vmem:[#allocation6 + $0x178] sm:$0xff]  ;;  %v869_v2 = vpack.c.bf16 %v115_v60, %v111_v59  ;;  %v114_v4 = vld [vmem:[#allocation6 + $0x160] sm:$0xff]  ;;  %v112_v5 = vld [vmem:[#allocation6 + $0x150] sm:$0xff] }
  0x47   :  { %v901_v6 = vpack.c.bf16 %v117_v62, %v113_v61  ;;  %v116_v7 = vld [vmem:[#allocation6 + $0x170] sm:$0xff]  ;;  %v119_v8 = vld [vmem:[#allocation6 + $0x188] sm:$0xff]  ;;  %v121_v10 = vld [vmem:[#allocation6 + $0x198] sm:$0xff]  ;;  %v871_v12 = vpack.c.bf16 %v114_v4, %v110_v3 }
  0x48   :  { %864 = vmatpush1.bf16.msra.mxu0 %v863_v51  ;;  %v123_v9 = vld [vmem:[#allocation6 + $0x1a8] sm:$0xff]  ;;  %v125_v11 = vld [vmem:[#allocation6 + $0x1b8] sm:$0xff]  ;;  %v903_v13 = vpack.c.bf16 %v116_v7, %v112_v5  ;;  %v118_v15 = vld [vmem:[#allocation6 + $0x180] sm:$0xff] }
  0x49   :  { %896 = vmatpush1.bf16.msra.mxu1 %v895_v52  ;;  %866 = vmatprep.subr.bf16.mxu0 %v865_v53  ;;  %v873_v14 = vpack.c.bf16 %v123_v9, %v119_v8  ;;  %v122_v16 = vld [vmem:[#allocation6 + $0x1a0] sm:$0xff]  ;;  %v120_v17 = vld [vmem:[#allocation6 + $0x190] sm:$0xff]  ;;  %v905_v18 = vpack.c.bf16 %v125_v11, %v121_v10  ;;  %v127_v20 = vld [vmem:[#allocation6 + $0x1c8] sm:$0xff] }
  0x4a   :  { %898 = vmatprep.subr.bf16.mxu1 %v897_v57  ;;  %v124_v19 = vld [vmem:[#allocation6 + $0x1b0] sm:$0xff]  ;;  %v131_v21 = vld [vmem:[#allocation6 + $0x1e8] sm:$0xff]  ;;  %v129_v22 = vld [vmem:[#allocation6 + $0x1d8] sm:$0xff]  ;;  %v875_v24 = vpack.c.bf16 %v122_v16, %v118_v15 }
  0x4b   :  { %v133_v23 = vld [vmem:[#allocation6 + $0x1f8] sm:$0xff]  ;;  %v907_v25 = vpack.c.bf16 %v124_v19, %v120_v17  ;;  %v877_v26 = vpack.c.bf16 %v131_v21, %v127_v20  ;;  %v126_v27 = vld [vmem:[#allocation6 + $0x1c0] sm:$0xff]  ;;  %v128_v30 = vld [vmem:[#allocation6 + $0x1d0] sm:$0xff] }
  0x4c   :  { %868 = vmatpush1.bf16.msra.mxu0 %v867_v63  ;;  %v130_v28 = vld [vmem:[#allocation6 + $0x1e0] sm:$0xff]  ;;  %v909_v29 = vpack.c.bf16 %v133_v23, %v129_v22  ;;  %v132_v31 = vld [vmem:[#allocation6 + $0x1f0] sm:$0xff]  ;;  %v69_v35 = vld [vmem:[#allocation3 + $0x8] sm:$0xff] }
  0x4d   :  { %900 = vmatpush1.bf16.msra.mxu1 %v899_v1  ;;  %870 = vmatprep.subr.bf16.mxu0 %v869_v2  ;;  %v879_v32 = vpack.c.bf16 %v130_v28, %v126_v27  ;;  %v911_v33 = vpack.c.bf16 %v132_v31, %v128_v30  ;;  %v68_v34 = vld [vmem:[#allocation3] sm:$0xff]  ;;  %v536_v36 = vld [vmem:[#allocation8 + $0x80] sm:$0xff]  ;;  %v537_v37 = vld [vmem:[#allocation8 + $0x88] sm:$0xff] }
  0x4e   :  { %902 = vmatprep.subr.bf16.mxu1 %v901_v6  ;;  %v568_v38 = vld [vmem:[#allocation8 + $0x180] sm:$0xff]  ;;  %v913_v39 = vpack.c.bf16 %v537_v37, %v536_v36  ;;  %v569_v40 = vld [vmem:[#allocation8 + $0x188] sm:$0xff]  ;;  %v538_v48 = vld [vmem:[#allocation8 + $0x90] sm:$0xff] }
  0x4f   :  { %v520_v41 = vld [vmem:[#allocation8] sm:$0xff]  ;;  %v521_v42 = vld [vmem:[#allocation8 + $0x8] sm:$0xff]  ;;  %v945_v43 = vpack.c.bf16 %v569_v40, %v568_v38  ;;  %v539_v49 = vld [vmem:[#allocation8 + $0x98] sm:$0xff] }
  0x50   :  { %872 = vmatpush1.bf16.msra.mxu0 %v871_v12  ;;  %v915_v44 = vpack.c.bf16 %v521_v42, %v520_v41  ;;  %v552_v45 = vld [vmem:[#allocation8 + $0x100] sm:$0xff]  ;;  %v553_v46 = vld [vmem:[#allocation8 + $0x108] sm:$0xff]  ;;  %v917_v50 = vpack.c.bf16 %v539_v49, %v538_v48  ;;  %v571_v51 = vld [vmem:[#allocation8 + $0x198] sm:$0xff] }
  0x51   :  { %904 = vmatpush1.bf16.msra.mxu1 %v903_v13  ;;  %874 = vmatprep.subr.bf16.mxu0 %v873_v14  ;;  %v947_v47 = vpack.c.bf16 %v553_v46, %v552_v45  ;;  %v522_v52 = vld [vmem:[#allocation8 + $0x10] sm:$0xff]  ;;  %v523_v53 = vld [vmem:[#allocation8 + $0x18] sm:$0xff]  ;;  %v540_v59 = vld [vmem:[#allocation8 + $0xa0] sm:$0xff] }
  0x52   :  { %906 = vmatprep.subr.bf16.mxu1 %v905_v18  ;;  %v919_v55 = vpack.c.bf16 %v523_v53, %v522_v52  ;;  %v554_v56 = vld [vmem:[#allocation8 + $0x110] sm:$0xff]  ;;  %v555_v57 = vld [vmem:[#allocation8 + $0x118] sm:$0xff]  ;;  %v541_v60 = vld [vmem:[#allocation8 + $0xa8] sm:$0xff] }
  0x53   :  { %v951_v58 = vpack.c.bf16 %v555_v57, %v554_v56  ;;  %v572_v61 = vld [vmem:[#allocation8 + $0x1a0] sm:$0xff]  ;;  %v921_v62 = vpack.c.bf16 %v541_v60, %v540_v59  ;;  %v573_v63 = vld [vmem:[#allocation8 + $0x1a8] sm:$0xff]  ;;  %v542_v8 = vld [vmem:[#allocation8 + $0xb0] sm:$0xff] }
  0x54   :  { %876 = vmatpush1.bf16.msra.mxu0 %v875_v24  ;;  %v524_v1 = vld [vmem:[#allocation8 + $0x20] sm:$0xff]  ;;  %v525_v2 = vld [vmem:[#allocation8 + $0x28] sm:$0xff]  ;;  %v953_v3 = vpack.c.bf16 %v573_v63, %v572_v61  ;;  %v543_v9 = vld [vmem:[#allocation8 + $0xb8] sm:$0xff] }
  0x55   :  { %908 = vmatpush1.bf16.msra.mxu1 %v907_v25  ;;  %878 = vmatprep.subr.bf16.mxu0 %v877_v26  ;;  %v923_v4 = vpack.c.bf16 %v525_v2, %v524_v1  ;;  %v556_v5 = vld [vmem:[#allocation8 + $0x120] sm:$0xff]  ;;  %v557_v6 = vld [vmem:[#allocation8 + $0x128] sm:$0xff]  ;;  %v574_v10 = vld [vmem:[#allocation8 + $0x1b0] sm:$0xff]  ;;  %v925_v11 = vpack.c.bf16 %v543_v9, %v542_v8 }
  0x56   :  { %910 = vmatprep.subr.bf16.mxu1 %v909_v29  ;;  %v955_v7 = vpack.c.bf16 %v557_v6, %v556_v5  ;;  %v575_v12 = vld [vmem:[#allocation8 + $0x1b8] sm:$0xff]  ;;  %v526_v13 = vld [vmem:[#allocation8 + $0x30] sm:$0xff]  ;;  %v544_v20 = vld [vmem:[#allocation8 + $0xc0] sm:$0xff] }
  0x57   :  { %v527_v14 = vld [vmem:[#allocation8 + $0x38] sm:$0xff]  ;;  %v957_v15 = vpack.c.bf16 %v575_v12, %v574_v10  ;;  %v558_v17 = vld [vmem:[#allocation8 + $0x130] sm:$0xff]  ;;  %v545_v21 = vld [vmem:[#allocation8 + $0xc8] sm:$0xff] }
  0x58   :  { %880 = vmatpush1.bf16.msra.mxu0 %v879_v32  ;;  %v927_v16 = vpack.c.bf16 %v527_v14, %v526_v13  ;;  %v559_v18 = vld [vmem:[#allocation8 + $0x138] sm:$0xff]  ;;  %v576_v22 = vld [vmem:[#allocation8 + $0x1c0] sm:$0xff]  ;;  %v929_v23 = vpack.c.bf16 %v545_v21, %v544_v20  ;;  %v577_v24 = vld [vmem:[#allocation8 + $0x1c8] sm:$0xff] }
  0x59   :  { %912 = vmatpush1.bf16.msra.mxu1 %v911_v33  ;;  %914 = vmatprep.subr.bf16.mxu0 %v913_v39  ;;  %v959_v19 = vpack.c.bf16 %v559_v18, %v558_v17  ;;  %v528_v25 = vld [vmem:[#allocation8 + $0x40] sm:$0xff]  ;;  %v529_v26 = vld [vmem:[#allocation8 + $0x48] sm:$0xff]  ;;  %v961_v27 = vpack.c.bf16 %v577_v24, %v576_v22  ;;  %v546_v32 = vld [vmem:[#allocation8 + $0xd0] sm:$0xff] }
  0x5a   :  { %946 = vmatprep.subr.bf16.mxu1 %v945_v43  ;;  %v931_v28 = vpack.c.bf16 %v529_v26, %v528_v25  ;;  %v560_v29 = vld [vmem:[#allocation8 + $0x140] sm:$0xff]  ;;  %v561_v30 = vld [vmem:[#allocation8 + $0x148] sm:$0xff]  ;;  %v547_v33 = vld [vmem:[#allocation8 + $0xd8] sm:$0xff] }
  0x5b   :  { %221 = vmatmul.mubr.f32.vlgmr.msra.gmra.mrb[0].mxu0 %v68_v34  ;;  %v963_v31 = vpack.c.bf16 %v561_v30, %v560_v29  ;;  %v579_v36 = vld [vmem:[#allocation8 + $0x1d8] sm:$0xff]  ;;  %v530_v37 = vld [vmem:[#allocation8 + $0x50] sm:$0xff]  ;;  %v549_v45 = vld [vmem:[#allocation8 + $0xe8] sm:$0xff] }
  0x5c   :  { %298 = vmatmul.mubr.f32.vlgmr.msra.gmra.mrb[0].mxu1 %v68_v34  ;;  %226 = vmatprep.mubr.f32.mxu0 %v1119_v0  ;;  %v578_v34 = vld [vmem:[#allocation8 + $0x1d0] sm:$0xff]  ;;  %v531_v38 = vld [vmem:[#allocation8 + $0x58] sm:$0xff]  ;;  %v580_v46 = vld [vmem:[#allocation8 + $0x1e0] sm:$0xff] }
  0x5d   :  { %303 = vmatprep.mubr.f32.mxu1 %v1119_v0  ;;  %916 = vmatpush3.bf16.msra.mxu0 %v915_v44  ;;  %v570_v0 = vld [vmem:[#allocation8 + $0x190] sm:$0xff]  ;;  %v965_v39 = vpack.c.bf16 %v579_v36, %v578_v34  ;;  %v935_v40 = vpack.c.bf16 %v531_v38, %v530_v37  ;;  %v563_v42 = vld [vmem:[#allocation8 + $0x158] sm:$0xff]  ;;  %v548_v44 = vld [vmem:[#allocation8 + $0xe0] sm:$0xff] }
  0x5e   :  { %948 = vmatpush3.bf16.msra.mxu1 %v947_v47  ;;  %v949_v54 = vpack.c.bf16 %v571_v51, %v570_v0  ;;  %918 = vmatprep.subr.bf16.mxu0 %v917_v50  ;;  %v562_v41 = vld [vmem:[#allocation8 + $0x150] sm:$0xff]  ;;  %v937_v47 = vpack.c.bf16 %v549_v45, %v548_v44  ;;  %v581_v48 = vld [vmem:[#allocation8 + $0x1e8] sm:$0xff]  ;;  %v532_v49 = vld [vmem:[#allocation8 + $0x60] sm:$0xff] }
  0x5f   :  { %227 = vmatmul.mubr.f32.gmra.mrb[2].mxu0 %v69_v35  ;;  %v967_v43 = vpack.c.bf16 %v563_v42, %v562_v41  ;;  %v533_v0 = vld [vmem:[#allocation8 + $0x68] sm:$0xff]  ;;  %v969_v50 = vpack.c.bf16 %v581_v48, %v580_v46  ;;  %v564_v52 = vld [vmem:[#allocation8 + $0x160] sm:$0xff]  ;;  %v551_v56 = vld [vmem:[#allocation8 + $0xf8] sm:$0xff] }
  0x60   :  { %304 = vmatmul.mubr.f32.gmra.mrb[2].mxu1 %v69_v35  ;;  %950 = vmatprep.subr.bf16.mxu1 %v949_v54  ;;  %v933_v35 = vpack.c.bf16 %v547_v33, %v546_v32  ;;  %v939_v51 = vpack.c.bf16 %v533_v0, %v532_v49  ;;  %v565_v53 = vld [vmem:[#allocation8 + $0x168] sm:$0xff]  ;;  %v582_v57 = vld [vmem:[#allocation8 + $0x1f0] sm:$0xff]  ;;  %v583_v59 = vld [vmem:[#allocation8 + $0x1f8] sm:$0xff] }
  0x61   :  { %920 = vmatpush3.bf16.msra.mxu0 %v919_v55  ;;  %v971_v54 = vpack.c.bf16 %v565_v53, %v564_v52  ;;  %v550_v55 = vld [vmem:[#allocation8 + $0xf0] sm:$0xff]  ;;  %v535_v61 = vld [vmem:[#allocation8 + $0x78] sm:$0xff] }
  0x62   :  { %952 = vmatpush3.bf16.msra.mxu1 %v951_v58  ;;  %922 = vmatprep.subr.bf16.mxu0 %v921_v62  ;;  %v941_v58 = vpack.c.bf16 %v551_v56, %v550_v55  ;;  %v534_v60 = vld [vmem:[#allocation8 + $0x70] sm:$0xff]  ;;  %v973_v62 = vpack.c.bf16 %v583_v59, %v582_v57  ;;  %v567_v2 = vld [vmem:[#allocation8 + $0x178] sm:$0xff] }
  0x63   :  { %954 = vmatprep.subr.bf16.mxu1 %v953_v3  ;;  %v943_v63 = vpack.c.bf16 %v535_v61, %v534_v60  ;;  %v566_v1 = vld [vmem:[#allocation8 + $0x170] sm:$0xff] }
  0x64   :  { %v975_v3 = vpack.c.bf16 %v567_v2, %v566_v1 }
  0x65   :  { %924 = vmatpush3.bf16.msra.mxu0 %v923_v4  ;;  %v136_v4 = vlaneseq }
  0x66   :  { %956 = vmatpush3.bf16.msra.mxu1 %v955_v7  ;;  %926 = vmatprep.subr.bf16.mxu0 %v925_v11  ;;  %v134_v7 = vld [vmem:[%s1351_s2] sm:$0xf] }
  0x67   :  { %958 = vmatprep.subr.bf16.mxu1 %v957_v15  ;;  %v137_v5 = vshrl.u32 %v136_v4, 7 }
  0x69   :  { %928 = vmatpush3.bf16.msra.mxu0 %v927_v16  ;;  %v138_v6 = vsub.s32 0, %v137_v5  ;;  %v146_v8 = vsub.s32 2, %v137_v5  ;;  %v142_v9 = vsub.s32 1, %v137_v5  ;;  %v150_v10 = vsub.s32 3, %v137_v5 }
  0x6a   :  { %960 = vmatpush3.bf16.msra.mxu1 %v959_v19  ;;  %930 = vmatprep.subr.bf16.mxu0 %v929_v23 }
  0x6b   :  { %962 = vmatprep.subr.bf16.mxu1 %v961_v27  ;;  %v139_v11 = vrot.slane %v134_v7, %v138_v6  ;;  %v147_v12 = vrot.slane %v134_v7, %v146_v8  ;;  %v143_v13 = vrot.slane %v134_v7, %v142_v9  ;;  %v151_v14 = vrot.slane %v134_v7, %v150_v10 }
  0x6d   :  { %932 = vmatpush3.bf16.msra.mxu0 %v931_v28 }
  0x6e   :  { %964 = vmatpush3.bf16.msra.mxu1 %v963_v31  ;;  %934 = vmatprep.subr.bf16.mxu0 %v933_v35 }
  0x6f   :  { %966 = vmatprep.subr.bf16.mxu1 %v965_v39 }
  0x71   :  { %936 = vmatpush3.bf16.msra.mxu0 %v935_v40 }
  0x72   :  { %968 = vmatpush3.bf16.msra.mxu1 %v967_v43  ;;  %938 = vmatprep.subr.bf16.mxu0 %v937_v47 }
  0x73   :  { %970 = vmatprep.subr.bf16.mxu1 %v969_v50 }
  0x75   :  { %940 = vmatpush3.bf16.msra.mxu0 %v939_v51 }
  0x76   :  { %972 = vmatpush3.bf16.msra.mxu1 %v971_v54  ;;  %942 = vmatprep.subr.bf16.mxu0 %v941_v58 }
  0x77   :  { %974 = vmatprep.subr.bf16.mxu1 %v973_v62 }
  0x79   :  { %944 = vmatpush3.bf16.msra.mxu0 %v943_v63 }
  0x7a   :  { %976 = vmatpush3.bf16.msra.mxu1 %v975_v3 }
 0x12e   :  { %v222_v15 = vpop.f32.mrb[0].mxu0 }
 0x12f   :  { %v1200_v16 = vadd.f32 %v222_v15, %v139_v11  ;;  %v299_v17 = vpop.f32.mrb[0].mxu1  ;;  %v224_v18 = vpop.f32.mrb[1].mxu0 }
 0x130   :  { %v1202_v19 = vadd.f32 %v299_v17, %v147_v12  ;;  %v1204_v20 = vadd.f32 %v224_v18, %v143_v13  ;;  %v301_v21 = vpop.f32.mrb[1].mxu1 }
 0x131   :  { %v1207_v22 = vmul.f32 0.70710677, %v1200_v16  ;;  %v1209_v23 = vadd.f32 %v301_v21, %v151_v14 }
 0x132   :  { %v1212_v24 = vmul.f32 0.70710677, %v1202_v19  ;;  %v1215_v25 = vmul.f32 0.70710677, %v1204_v20  ;;  %v228_v26 = vpop.f32.mrb[2].mxu0 }
 0x133   :  { %v318_v27 = vand.u32 2147483647, %v1207_v22  ;;  %v1219_v28 = vmul.f32 0.70710677, %v1209_v23  ;;  %v305_v29 = vpop.f32.mrb[2].mxu1  ;;  %v1224_v36 = vadd.f32 %v228_v26, %v139_v11  ;;  %v230_v39 = vpop.f32.mrb[3].mxu0 }
 0x134   :  { %v320_v30 = vand.u32 2147483647, %v1212_v24  ;;  %v319_v31 = vand.u32 2147483647, %v1215_v25  ;;  %v307_v40 = vpop.f32.mrb[3].mxu1  ;;  %v1229_v45 = vadd.f32 %v305_v29, %v147_v12  ;;  %v1231_v46 = vadd.f32 %v230_v39, %v143_v13 }
 0x135   :  { %v326_v32 = vmul.f32 0.3275911, %v318_v27  ;;  %v321_v33 = vand.u32 2147483647, %v1219_v28  ;;  %v1227_v43 = vmul.f32 0.70710677, %v1224_v36  ;;  %v1234_v48 = vadd.f32 %v307_v40, %v151_v14 }
 0x136   :  { %v328_v34 = vmul.f32 0.3275911, %v320_v30  ;;  %v327_v35 = vmul.f32 0.3275911, %v319_v31  ;;  %v1237_v49 = vmul.f32 0.70710677, %v1229_v45 }
 0x137   :  { %v334_v37 = vadd.f32 1.0, %v326_v32  ;;  %v329_v38 = vmul.f32 0.3275911, %v321_v33  ;;  %v322_v47 = vand.u32 2147483647, %v1227_v43  ;;  %v422_v50 = vsub.f32 0.0, %v318_v27 }
 0x138   :  { %v336_v41 = vadd.f32 1.0, %v328_v34  ;;  %v335_v42 = vadd.f32 1.0, %v327_v35  ;;  %v1240_v0 = vmul.f32 0.70710677, %v1231_v46  ;;  %v1243_v52 = vmul.f32 0.70710677, %v1234_v48 }
 0x139   :  { %986 = vrcp.f32 %v334_v37  ;;  %v337_v44 = vadd.f32 1.0, %v329_v38  ;;  %v330_v51 = vmul.f32 0.3275911, %v322_v47  ;;  %v424_v53 = vsub.f32 0.0, %v320_v30 }
 0x13a   :  { %988 = vrcp.f32 %v336_v41  ;;  %v324_v54 = vand.u32 2147483647, %v1237_v49  ;;  %v323_v55 = vand.u32 2147483647, %v1240_v0  ;;  %v423_v56 = vsub.f32 0.0, %v319_v31 }
 0x13b   :  { %990 = vrcp.f32 %v335_v42  ;;  %v338_v57 = vadd.f32 1.0, %v330_v51  ;;  %v425_v58 = vsub.f32 0.0, %v321_v33  ;;  %v430_v61 = vmul.f32 %v422_v50, %v318_v27 }
 0x13c   :  { %992 = vrcp.f32 %v337_v44  ;;  %v332_v59 = vmul.f32 0.3275911, %v324_v54  ;;  %v331_v60 = vmul.f32 0.3275911, %v323_v55  ;;  %v1248_v62 = vand.u32 2147483647, %v1243_v52 }
 0x13d   :  { %994 = vrcp.f32 %v338_v57  ;;  %v432_v1 = vmul.f32 %v424_v53, %v320_v30  ;;  %v426_v2 = vsub.f32 0.0, %v322_v47  ;;  %v431_v7 = vmul.f32 %v423_v56, %v319_v31 }
 0x13e   :  { %v340_v3 = vadd.f32 1.0, %v332_v59  ;;  %v339_v4 = vadd.f32 1.0, %v331_v60  ;;  %v333_v8 = vmul.f32 0.3275911, %v1248_v62  ;;  %v433_v10 = vmul.f32 %v425_v58, %v321_v33 }
 0x13f   :  { %v428_v11 = vsub.f32 0.0, %v324_v54  ;;  %v438_v13 = vmul.f32 1.442695, %v430_v61  ;;  %v442_v18 = vmul.f32 1.442695, %v432_v1  ;;  %v434_v21 = vmul.f32 %v426_v2, %v322_v47 }
 0x140   :  { %996 = vrcp.f32 %v340_v3  ;;  %v341_v14 = vadd.f32 1.0, %v333_v8  ;;  %v427_v26 = vsub.f32 0.0, %v323_v55  ;;  %v440_v30 = vmul.f32 1.442695, %v431_v7 }
 0x141   :  { %998 = vrcp.f32 %v339_v4  ;;  %v444_v33 = vmul.f32 1.442695, %v433_v10  ;;  %v436_v34 = vmul.f32 %v428_v11, %v324_v54  ;;  %v446_v40 = vmul.f32 1.442695, %v434_v21 }
 0x142   :  { %1000 = vrcp.f32 %v341_v14  ;;  %v435_v41 = vmul.f32 %v427_v26, %v323_v55  ;;  %v429_v55 = vsub.f32 0.0, %v1248_v62  ;;  %vm470_vm0 = vcmp.lt.f32.partialorder %v1207_v22, 0.0 }
 0x143   :  { %v1250_v63 = vpop.eup %986  ;;  %1002 = vpow2.f32 %v438_v13  ;;  %v450_v54 = vmul.f32 1.442695, %v436_v34  ;;  %vm472_vm1 = vcmp.lt.f32.partialorder %v1212_v24, 0.0  ;;  %vm471_vm2 = vcmp.lt.f32.partialorder %v1215_v25, 0.0 }
 0x144   :  { %v1252_v5 = vpop.eup %988  ;;  %v350_v6 = vmul.f32 1.0614054, %v1250_v63  ;;  %1004 = vpow2.f32 %v442_v18  ;;  %v448_v1 = vmul.f32 1.442695, %v435_v41  ;;  %vm473_vm3 = vcmp.lt.f32.partialorder %v1219_v28, 0.0 }
 0x145   :  { %v352_v9 = vmul.f32 1.0614054, %v1252_v5  ;;  %v1257_v15 = vpop.eup %990  ;;  %1006 = vpow2.f32 %v440_v30  ;;  %vm474_vm4 = vcmp.lt.f32.partialorder %v1227_v43, 0.0  ;;  %vm475_vm5 = vcmp.lt.f32.partialorder %v1240_v0, 0.0 }
 0x146   :  { %v358_v12 = vadd.f32 -1.4531521, %v350_v6  ;;  %v351_v29 = vmul.f32 1.0614054, %v1257_v15  ;;  %v1261_v31 = vpop.eup %992  ;;  %1008 = vpow2.f32 %v444_v33  ;;  %vm476_vm6 = vcmp.lt.f32.partialorder %v1237_v49, 0.0 }
 0x147   :  { %v360_v17 = vadd.f32 -1.4531521, %v352_v9  ;;  %v353_v38 = vmul.f32 1.0614054, %v1261_v31  ;;  %v1265_v42 = vpop.eup %994  ;;  %1010 = vpow2.f32 %v446_v40  ;;  %vm477_vm7 = vcmp.lt.f32.partialorder %v1243_v52, 0.0 }
 0x148   :  { %v366_v27 = vmul.f32 %v1250_v63, %v358_v12  ;;  %v359_v37 = vadd.f32 -1.4531521, %v351_v29  ;;  %v354_v53 = vmul.f32 1.0614054, %v1265_v42  ;;  %1012 = vpow2.f32 %v450_v54  ;;  %v772_v52 = vld [vmem:[%s1353_s4] ss:$0 sm:$0xff] }
 0x149   :  { %v368_v32 = vmul.f32 %v1252_v5, %v360_v17  ;;  %v361_v50 = vadd.f32 -1.4531521, %v353_v38  ;;  %1014 = vpow2.f32 %v448_v1 }
 0x14a   :  { %v374_v35 = vadd.f32 1.4214138, %v366_v27  ;;  %v367_v47 = vmul.f32 %v1257_v15, %v359_v37  ;;  %v1273_v59 = vpop.eup %996  ;;  %v362_v61 = vadd.f32 -1.4531521, %v354_v53 }
 0x14b   :  { %v376_v39 = vadd.f32 1.4214138, %v368_v32  ;;  %v369_v58 = vmul.f32 %v1261_v31, %v361_v50  ;;  %v1275_v2 = vpop.eup %998  ;;  %v356_v7 = vmul.f32 1.0614054, %v1273_v59 }
 0x14c   :  { %v382_v44 = vmul.f32 %v1250_v63, %v374_v35  ;;  %v375_v57 = vadd.f32 1.4214138, %v367_v47  ;;  %v370_v9 = vmul.f32 %v1265_v42, %v362_v61  ;;  %v355_v10 = vmul.f32 1.0614054, %v1275_v2  ;;  %v1284_v17 = vpop.eup %1000 }
 0x14d   :  { %v384_v51 = vmul.f32 %v1252_v5, %v376_v39  ;;  %v377_v6 = vadd.f32 1.4214138, %v369_v58  ;;  %v364_v14 = vadd.f32 -1.4531521, %v356_v7  ;;  %v1003_v27 = vpop.eup %1002  ;;  %v357_v39 = vmul.f32 1.0614054, %v1284_v17 }
 0x14e   :  { %v390_v56 = vadd.f32 -0.28449672, %v382_v44  ;;  %v383_v4 = vmul.f32 %v1257_v15, %v375_v57  ;;  %v378_v21 = vadd.f32 1.4214138, %v370_v9  ;;  %v363_v26 = vadd.f32 -1.4531521, %v355_v10  ;;  %v1005_v34 = vpop.eup %1004 }
 0x14f   :  { %v392_v60 = vadd.f32 -0.28449672, %v384_v51  ;;  %v385_v13 = vmul.f32 %v1261_v31, %v377_v6  ;;  %v372_v33 = vmul.f32 %v1273_v59, %v364_v14  ;;  %v1007_v40 = vpop.eup %1006  ;;  %v437_v6 = vmul.f32 %v429_v55, %v1248_v62 }
 0x150   :  { %v398_v3 = vmul.f32 %v1250_v63, %v390_v56  ;;  %v391_v12 = vadd.f32 -0.28449672, %v383_v4  ;;  %v386_v37 = vmul.f32 %v1265_v42, %v378_v21  ;;  %v371_v38 = vmul.f32 %v1275_v2, %v363_v26  ;;  %v1009_v50 = vpop.eup %1008 }
 0x151   :  { %v400_v8 = vmul.f32 %v1252_v5, %v392_v60  ;;  %v393_v32 = vadd.f32 -0.28449672, %v385_v13  ;;  %v380_v47 = vadd.f32 1.4214138, %v372_v33  ;;  %v365_v56 = vadd.f32 -1.4531521, %v357_v39  ;;  %v1011_v61 = vpop.eup %1010 }
 0x152   :  { %v406_v11 = vadd.f32 0.2548296, %v398_v3  ;;  %v399_v30 = vmul.f32 %v1257_v15, %v391_v12  ;;  %v394_v53 = vadd.f32 -0.28449672, %v386_v37  ;;  %v379_v54 = vadd.f32 1.4214138, %v371_v38 }
 0x153   :  { %v408_v18 = vadd.f32 0.2548296, %v400_v8  ;;  %v388_v60 = vmul.f32 %v1273_v59, %v380_v47  ;;  %v373_v14 = vmul.f32 %v1284_v17, %v365_v56 }
 0x154   :  { %v414_v29 = vmul.f32 %v1250_v63, %v406_v11  ;;  %v407_v44 = vadd.f32 0.2548296, %v399_v30  ;;  %v401_v63 = vmul.f32 %v1261_v31, %v393_v32  ;;  %v402_v3 = vmul.f32 %v1265_v42, %v394_v53  ;;  %v1013_v11 = vpop.eup %1012 }
 0x155   :  { %v416_v35 = vmul.f32 %v1252_v5, %v408_v18  ;;  %v387_v4 = vmul.f32 %v1275_v2, %v379_v54  ;;  %v396_v10 = vadd.f32 -0.28449672, %v388_v60  ;;  %v452_v30 = vmul.f32 1.442695, %v437_v6 }
 0x156   :  { %v454_v41 = vmul.f32 %v1003_v27, %v414_v29  ;;  %v415_v57 = vmul.f32 %v1257_v15, %v407_v44  ;;  %v409_v58 = vadd.f32 0.2548296, %v401_v63  ;;  %v410_v13 = vadd.f32 0.2548296, %v402_v3  ;;  %v1015_v29 = vpop.eup %1014 }
 0x157   :  { %v456_v51 = vmul.f32 %v1005_v34, %v416_v35  ;;  %v395_v15 = vadd.f32 -0.28449672, %v387_v4  ;;  %v404_v27 = vmul.f32 %v1273_v59, %v396_v10  ;;  %v381_v38 = vadd.f32 1.4214138, %v373_v14 }
 0x158   :  { %v462_v5 = vsub.f32 1.0, %v454_v41  ;;  %v455_v8 = vmul.f32 %v1007_v40, %v415_v57  ;;  %v417_v9 = vmul.f32 %v1261_v31, %v409_v58  ;;  %v418_v31 = vmul.f32 %v1265_v42, %v410_v13 }
 0x159   :  { %v464_v1 = vsub.f32 1.0, %v456_v51  ;;  %v403_v55 = vmul.f32 %v1275_v2, %v395_v15  ;;  %v412_v35 = vadd.f32 0.2548296, %v404_v27  ;;  %1016 = vpow2.f32 %v452_v30 }
 0x15a   :  { %v478_v7 = vsub.f32 0.0, %v462_v5  ;;  %v463_v21 = vsub.f32 1.0, %v455_v8  ;;  %v457_v26 = vmul.f32 %v1009_v50, %v417_v9  ;;  %v458_v22 = vmul.f32 %v1011_v61, %v418_v31 }
 0x15b   :  { %v480_v12 = vsub.f32 0.0, %v464_v1  ;;  %v411_v37 = vadd.f32 0.2548296, %v403_v55  ;;  %v420_v41 = vmul.f32 %v1273_v59, %v412_v35  ;;  %v389_v28 = vmul.f32 %v1284_v17, %v381_v38 }
 0x15c   :  { %v486_v18 = vsel %vm470_vm0, %v478_v7, %v462_v5  ;;  %v479_v33 = vsub.f32 0.0, %v463_v21  ;;  %v465_v34 = vsub.f32 1.0, %v457_v26  ;;  %v466_v44 = vsub.f32 1.0, %v458_v22 }
 0x15d   :  { %v488_v62 = vsel %vm472_vm1, %v480_v12, %v464_v1  ;;  %v494_v32 = vadd.f32 1.0, %v486_v18  ;;  %v419_v63 = vmul.f32 %v1275_v2, %v411_v37  ;;  %v460_v51 = vmul.f32 %v1013_v11, %v420_v41 }
 0x15e   :  { %v496_v39 = vadd.f32 1.0, %v488_v62  ;;  %v487_v40 = vsel %vm471_vm2, %v479_v33, %v463_v21  ;;  %v481_v24 = vsub.f32 0.0, %v465_v34  ;;  %v482_v56 = vsub.f32 0.0, %v466_v44 }
 0x15f   :  { %v495_v42 = vadd.f32 1.0, %v487_v40  ;;  %v502_v47 = vmul.f32 0.5, %v494_v32  ;;  %v459_v5 = vmul.f32 %v1015_v29, %v419_v63  ;;  %v468_v25 = vsub.f32 1.0, %v460_v51 }
 0x160   :  { %v489_v50 = vsel %vm473_vm3, %v481_v24, %v465_v34  ;;  %v504_v57 = vmul.f32 0.5, %v496_v39  ;;  %v397_v58 = vadd.f32 -0.28449672, %v389_v28  ;;  %v490_v61 = vsel %vm474_vm4, %v482_v56, %v466_v44 }
 0x161   :  { %v503_v53 = vmul.f32 0.5, %v495_v42  ;;  %v497_v54 = vadd.f32 1.0, %v489_v50  ;;  %v467_v2 = vsub.f32 1.0, %v459_v5  ;;  %v510_v1 = vmul.f32 %v502_v47, %v1200_v16 }
 0x162   :  { %v405_v3 = vmul.f32 %v1284_v17, %v397_v58  ;;  %v498_v6 = vadd.f32 1.0, %v490_v61  ;;  %v512_v8 = vmul.f32 %v504_v57, %v1202_v19  ;;  %v484_v9 = vsub.f32 0.0, %v468_v25 }
 0x163   :  { %v511_v59 = vmul.f32 %v503_v53, %v1204_v20  ;;  %v505_v60 = vmul.f32 0.5, %v497_v54  ;;  %v483_v7 = vsub.f32 0.0, %v467_v2  ;;  %v1017_v16 = vpop.eup %1016 }
 0x164   :  { %v413_v43 = vadd.f32 0.2548296, %v405_v3  ;;  %v506_v12 = vmul.f32 0.5, %v498_v6  ;;  %v492_v15 = vsel %vm476_vm6, %v484_v9, %v468_v25 }
 0x165   :  { %v513_v4 = vmul.f32 %v505_v60, %v1209_v23  ;;  %648 = vmatprep.mubr.f32.mxu0 %v511_v59  ;;  %v491_v20 = vsel %vm475_vm5, %v483_v7, %v467_v2  ;;  %v500_v18 = vadd.f32 1.0, %v492_v15 }
 0x166   :  { %649 = vmatmul.mubr.f32.vlgmr.msra.gmra.mrb[4].mxu0 %v510_v1  ;;  %v499_v10 = vadd.f32 1.0, %v491_v20  ;;  %v421_v11 = vmul.f32 %v1284_v17, %v413_v43  ;;  %v514_v0 = vmul.f32 %v506_v12, %v1224_v36 }
 0x167   :  { %723 = vmatprep.mubr.f32.mxu1 %v513_v4  ;;  %v508_v27 = vmul.f32 0.5, %v500_v18 }
 0x168   :  { %724 = vmatmul.mubr.f32.vlgmr.msra.gmra.mrb[4].mxu1 %v512_v8  ;;  %v507_v23 = vmul.f32 0.5, %v499_v10  ;;  %v461_v13 = vmul.f32 %v1017_v16, %v421_v11 }
 0x169   :  { %v516_v62 = vmul.f32 %v508_v27, %v1229_v45 }
 0x16a   :  { %v515_v19 = vmul.f32 %v507_v23, %v1231_v46  ;;  %v469_v14 = vsub.f32 1.0, %v461_v13 }
 0x16c   :  { %v485_v21 = vsub.f32 0.0, %v469_v14  ;;  %653 = vmatprep.mubr.f32.mxu0 %v515_v19 }
 0x16d   :  { %654 = vmatmul.mubr.f32.gmra.mrb[6].mxu0 %v514_v0 }
 0x16e   :  { %v493_v17 = vsel %vm477_vm7, %v485_v21, %v469_v14 }
 0x16f   :  { %v501_v26 = vadd.f32 1.0, %v493_v17 }
 0x171   :  { %v509_v29 = vmul.f32 0.5, %v501_v26 }
 0x173   :  { %v517_v49 = vmul.f32 %v509_v29, %v1234_v48 }
 0x175   :  { %728 = vmatprep.mubr.f32.mxu1 %v517_v49 }
 0x176   :  { %729 = vmatmul.mubr.f32.gmra.mrb[6].mxu1 %v516_v62 }
 0x239   :  { %v805_v46 = vpop.f32.mrb[4].mxu0 }
 0x23a   :  { %v806_v31 = vpop.f32.mrb[5].mxu0 }
 0x23b   :  { %v843_v55 = vpop.f32.mrb[4].mxu1  ;;  %v807_v36 = vadd.f32 %v806_v31, %v805_v46 }
 0x23c   :  { %v844_v30 = vpop.f32.mrb[5].mxu1 }
 0x23d   :  { %v845_v32 = vadd.f32 %v844_v30, %v843_v55 }
 0x23f   :  { %v726_v33 = vadd.f32 %v845_v32, %v807_v36 }
 0x240   :  { %v808_v35 = vpop.f32.mrb[6].mxu0 }
 0x241   :  { %v750_v34 = vadd.f32 %v772_v52, %v726_v33  ;;  %v809_v22 = vpop.f32.mrb[7].mxu0 }
 0x242   :  { %v810_v48 = vadd.f32 %v809_v22, %v808_v35 }
 0x243   :  { %752 = vst [vmem:[#allocation9] sm:$0xff] %v750_v34 }
 0x249   :  { %v846_v37 = vpop.f32.mrb[6].mxu1 }
 0x24a   :  { %v847_v45 = vpop.f32.mrb[7].mxu1 }
 0x24b   :  { %v848_v38 = vadd.f32 %v847_v45, %v846_v37 }
 0x24d   :  { %v731_v39 = vadd.f32 %v848_v38, %v810_v48 }
 0x24f   :  { %v751_v40 = vadd.f32 %v772_v52, %v731_v39 }
 0x251   :  { %753 = vst [vmem:[#allocation9 + $0x8] sm:$0xff] %v751_v40 }
 0x252   :  { %1095 = shalt.err (!%p1092_p0)
}
 0x253   :  { %s1096_s12 = scalar_lea.hbm %s1354_s5, 256 }
 0x254   :  { %p1097_p1 = scmp.ne.s32.totalorder %s1354_s5, %s1096_s12  ;;  %p1100_p2 = scmp.lt.u32.totalorder %s1096_s12, %s1354_s5 }
 0x256   :  { %p1102_p3 = pnand %p1100_p2, %p1097_p1 }
 0x258   :  { %1105 = shalt.err (!%p1102_p3)
}
 0x259   :  { %765 = dma.vmem_to_hbm [thread:$0]  %s760_s9, 256, %s1354_s5, [#allocation5], %s1116_s1, %s1116_s1, %s1117_s17  }
 0x25a   :  { %1110 = dma.done.wait [#allocation5], 256  }
 0x25b   :  { %1111 = vsyncadd [#allocation5], 4294967040 }
 0x25c   :  { %769 = vsyncpa [#allocation4], 1 }
 0x25d   :  { %770 = vsyncpa [#allocation7], 1 }
 0x25e   :  { %771 = vsyncpa [#allocation5], 1 }

// kernel: tpu_custom_call.1
= control target key start
LH: loop header
LB: loop body
LE: loop exit
PB: predicated region body
PF: predicated region fallthrough
CT: control target
= control target key end

     0   :  { %10 = vsyncpa [#allocation4], 0  ;;  %s1349_s0 = inlined_call_operand.hbm [shape: f32[16,128], index: 0, kind: input, shape index: {}]   ;;  %s1350_s1 = inlined_call_operand.hbm [shape: f32[128,512], index: 1, kind: input, shape index: {}]   ;;  %s1351_s2 = inlined_call_operand.vmem [shape: f32[1,512], index: 2, kind: input, shape index: {}]   ;;  %s1352_s3 = inlined_call_operand.hbm [shape: f32[512,128], index: 3, kind: input, shape index: {}]   ;;  %s1353_s4 = inlined_call_operand.vmem [shape: f32[1,128], index: 4, kind: input, shape index: {}]   ;;  %s1354_s5 = inlined_call_operand.hbm [shape: f32[16,128], index: 5, kind: output, shape index: {}]  }
   0x1   :  { %11 = vsyncpa [#allocation7], 0 }
   0x2   :  { %12 = vsyncpa [#allocation5], 0  ;;  %s1112_s18 = smov [#allocation6]   ;;  %s1018_s22 = scalar_lea.hbm %s1350_s1, 8192 }
   0x3   :  { %s30_s19 = sshll.u32 %s1112_s18, 4  ;;  %p1019_p0 = scmp.ne.s32.totalorder %s1350_s1, %s1018_s22  ;;  %s31_s19 = int_to_ptr.vmem [resolvable:$true] %s30_s19 }
   0x4   :  { %p1022_p1 = scmp.lt.u32.totalorder %s1018_s22, %s1350_s1 }
   0x6   :  { %p1024_p2 = pnand %p1022_p1, %p1019_p0 }
   0x8   :  { %1027 = shalt.err (!%p1024_p2)
}
   0x9   :  { %s1028_s27 = scalar_lea.vmem %s31_s19, 8192  ;;  %p1033_p4 = scmp.lt.s32.totalorder %s31_s19, %s31_s19 }
   0xa   :  { %p1029_p3 = scmp.ne.s32.totalorder %s31_s19, %s1028_s27  ;;  %p1034_p5 = scmp.lt.s32.totalorder %s1028_s27, %s1028_s27 }
   0xc   :  { %p1035_p6 = por %p1034_p5, %p1033_p4 }
   0xe   :  { %p1036_p7 = pnand %p1035_p6, %p1029_p3 }
  0x10   :  { %1039 = shalt.err (!%p1036_p7)
}
  0x11   :  { %s1113_s28 = smov 512   ;;  %s1114_s29 = smov 32  }
  0x12   :  { %36 = dma.hbm_to_vmem [thread:$0]  %s1350_s1, 8192, %s31_s19, [#allocation7], %s1113_s28, %s1113_s28, %s1114_s29  }
  0x13   :  { %s1115_s7 = smov [#allocation3]   ;;  %s1040_s11 = scalar_lea.hbm %s1349_s0, 256 }
  0x14   :  { %s18_s8 = sshll.u32 %s1115_s7, 4  ;;  %p1041_p8 = scmp.ne.s32.totalorder %s1349_s0, %s1040_s11  ;;  %s19_s8 = int_to_ptr.vmem [resolvable:$true] %s18_s8 }
  0x15   :  { %p1044_p9 = scmp.lt.u32.totalorder %s1040_s11, %s1349_s0 }
  0x17   :  { %p1046_p10 = pnand %p1044_p9, %p1041_p8 }
  0x19   :  { %1049 = shalt.err (!%p1046_p10)
}
  0x1a   :  { %s1050_s16 = scalar_lea.vmem %s19_s8, 256  ;;  %p1055_p12 = scmp.lt.s32.totalorder %s19_s8, %s19_s8 }
  0x1b   :  { %p1051_p11 = scmp.ne.s32.totalorder %s19_s8, %s1050_s16  ;;  %p1056_p13 = scmp.lt.s32.totalorder %s1050_s16, %s1050_s16 }
  0x1d   :  { %p1057_p0 = por %p1056_p13, %p1055_p12 }
  0x1f   :  { %p1058_p1 = pnand %p1057_p0, %p1051_p11 }
  0x21   :  { %1061 = shalt.err (!%p1058_p1)
}
  0x22   :  { %s1116_s1 = smov 128   ;;  %s1117_s17 = smov 8  }
  0x23   :  { %24 = dma.hbm_to_vmem [thread:$0]  %s1349_s0, 256, %s19_s8, [#allocation4], %s1116_s1, %s1116_s1, %s1117_s17  }
  0x24   :  { %s1118_s20 = smov [#allocation8]   ;;  %s1062_s24 = scalar_lea.hbm %s1352_s3, 8192 }
  0x25   :  { %s44_s21 = sshll.u32 %s1118_s20, 4  ;;  %p1063_p2 = scmp.ne.s32.totalorder %s1352_s3, %s1062_s24  ;;  %s45_s21 = int_to_ptr.vmem [resolvable:$true] %s44_s21 }
  0x26   :  { %p1066_p3 = scmp.lt.u32.totalorder %s1062_s24, %s1352_s3 }
  0x28   :  { %p1068_p4 = pnand %p1066_p3, %p1063_p2 }
  0x2a   :  { %1071 = shalt.err (!%p1068_p4)
}
  0x2b   :  { %s1072_s29 = scalar_lea.vmem %s45_s21, 8192  ;;  %p1077_p6 = scmp.lt.s32.totalorder %s45_s21, %s45_s21 }
  0x2c   :  { %p1073_p5 = scmp.ne.s32.totalorder %s45_s21, %s1072_s29  ;;  %p1078_p7 = scmp.lt.s32.totalorder %s1072_s29, %s1072_s29 }
  0x2e   :  { %p1079_p8 = por %p1078_p7, %p1077_p6 }
  0x30   :  { %p1080_p9 = pnand %p1079_p8, %p1073_p5 }
  0x32   :  { %1083 = shalt.err (!%p1080_p9)
}
  0x33   :  { %50 = dma.hbm_to_vmem [thread:$0]  %s1352_s3, 8192, %s45_s21, [#allocation7], %s1116_s1, %s1116_s1, %s1117_s17  }
  0x34   :  { %1106 = dma.done.wait [#allocation4], 256  }
  0x35   :  { %1107 = vsyncadd [#allocation4], 4294967040 }
  0x36   :  { %1108 = dma.done.wait [#allocation7], 16384  }
  0x37   :  { %1109 = vsyncadd [#allocation7], 4294950912  ;;  %v1119_v0 = vmov 0.0   ;;  %v71_v1 = vld [vmem:[#allocation6 + $0x8] sm:$0xff]  ;;  %v73_v3 = vld [vmem:[#allocation6 + $0x18] sm:$0xff]  ;;  %s1120_s8 = smov [#allocation9]  }
  0x38   :  { %220 = vmatprep.mubr.f32.mxu0 %v1119_v0  ;;  %297 = vmatprep.mubr.f32.mxu1 %v1119_v0  ;;  %v75_v2 = vld [vmem:[#allocation6 + $0x28] sm:$0xff]  ;;  %v77_v5 = vld [vmem:[#allocation6 + $0x38] sm:$0xff]  ;;  %v70_v6 = vld [vmem:[#allocation6] sm:$0xff]  ;;  %s759_s9 = sshll.u32 %s1120_s8, 4  ;;  %s760_s9 = int_to_ptr.vmem [resolvable:$true] %s759_s9 }
  0x39   :  { %v849_v4 = vpack.c.bf16 %v75_v2, %v71_v1  ;;  %v74_v7 = vld [vmem:[#allocation6 + $0x20] sm:$0xff]  ;;  %v881_v8 = vpack.c.bf16 %v77_v5, %v73_v3  ;;  %v72_v10 = vld [vmem:[#allocation6 + $0x10] sm:$0xff]  ;;  %v79_v12 = vld [vmem:[#allocation6 + $0x48] sm:$0xff]  ;;  %s1084_s10 = scalar_lea.vmem %s760_s9, 256  ;;  %p1089_p11 = scmp.lt.s32.totalorder %s760_s9, %s760_s9 }
  0x3a   :  { %v851_v9 = vpack.c.bf16 %v74_v7, %v70_v6  ;;  %v76_v11 = vld [vmem:[#allocation6 + $0x30] sm:$0xff]  ;;  %v83_v14 = vld [vmem:[#allocation6 + $0x68] sm:$0xff]  ;;  %v81_v15 = vld [vmem:[#allocation6 + $0x58] sm:$0xff]  ;;  %p1085_p10 = scmp.ne.s32.totalorder %s760_s9, %s1084_s10  ;;  %p1090_p12 = scmp.lt.s32.totalorder %s1084_s10, %s1084_s10 }
  0x3b   :  { %850 = vmatprep.subr.bf16.mxu0 %v849_v4  ;;  %v883_v13 = vpack.c.bf16 %v76_v11, %v72_v10  ;;  %v85_v16 = vld [vmem:[#allocation6 + $0x78] sm:$0xff]  ;;  %882 = vmatprep.subr.bf16.mxu1 %v881_v8  ;;  %v853_v17 = vpack.c.bf16 %v83_v14, %v79_v12  ;;  %v78_v19 = vld [vmem:[#allocation6 + $0x40] sm:$0xff]  ;;  %v80_v21 = vld [vmem:[#allocation6 + $0x50] sm:$0xff] }
  0x3c   :  { %852 = vmatpush1.bf16.msra.mxu0 %v851_v9  ;;  %v885_v18 = vpack.c.bf16 %v85_v16, %v81_v15  ;;  %v82_v20 = vld [vmem:[#allocation6 + $0x60] sm:$0xff]  ;;  %v84_v23 = vld [vmem:[#allocation6 + $0x70] sm:$0xff]  ;;  %v87_v24 = vld [vmem:[#allocation6 + $0x88] sm:$0xff]  ;;  %p1091_p13 = por %p1090_p12, %p1089_p11 }
  0x3d   :  { %884 = vmatpush1.bf16.msra.mxu1 %v883_v13  ;;  %v855_v22 = vpack.c.bf16 %v82_v20, %v78_v19  ;;  %v91_v25 = vld [vmem:[#allocation6 + $0xa8] sm:$0xff]  ;;  %854 = vmatprep.subr.bf16.mxu0 %v853_v17  ;;  %v887_v26 = vpack.c.bf16 %v84_v23, %v80_v21  ;;  %v89_v28 = vld [vmem:[#allocation6 + $0x98] sm:$0xff]  ;;  %v86_v30 = vld [vmem:[#allocation6 + $0x80] sm:$0xff] }
  0x3e   :  { %886 = vmatprep.subr.bf16.mxu1 %v885_v18  ;;  %v857_v27 = vpack.c.bf16 %v91_v25, %v87_v24  ;;  %v93_v29 = vld [vmem:[#allocation6 + $0xb8] sm:$0xff]  ;;  %v90_v32 = vld [vmem:[#allocation6 + $0xa0] sm:$0xff]  ;;  %v88_v33 = vld [vmem:[#allocation6 + $0x90] sm:$0xff]  ;;  %p1092_p0 = pnand %p1091_p13, %p1085_p10 }
  0x3f   :  { %v889_v31 = vpack.c.bf16 %v93_v29, %v89_v28  ;;  %v92_v34 = vld [vmem:[#allocation6 + $0xb0] sm:$0xff]  ;;  %v859_v35 = vpack.c.bf16 %v90_v32, %v86_v30  ;;  %v95_v36 = vld [vmem:[#allocation6 + $0xc8] sm:$0xff]  ;;  %v97_v38 = vld [vmem:[#allocation6 + $0xd8] sm:$0xff] }
  0x40   :  { %856 = vmatpush1.bf16.msra.mxu0 %v855_v22  ;;  %v99_v37 = vld [vmem:[#allocation6 + $0xe8] sm:$0xff]  ;;  %v891_v39 = vpack.c.bf16 %v92_v34, %v88_v33  ;;  %v101_v41 = vld [vmem:[#allocation6 + $0xf8] sm:$0xff]  ;;  %v94_v42 = vld [vmem:[#allocation6 + $0xc0] sm:$0xff] }
  0x41   :  { %888 = vmatpush1.bf16.msra.mxu1 %v887_v26  ;;  %858 = vmatprep.subr.bf16.mxu0 %v857_v27  ;;  %v861_v40 = vpack.c.bf16 %v99_v37, %v95_v36  ;;  %v98_v43 = vld [vmem:[#allocation6 + $0xe0] sm:$0xff]  ;;  %v893_v44 = vpack.c.bf16 %v101_v41, %v97_v38  ;;  %v96_v45 = vld [vmem:[#allocation6 + $0xd0] sm:$0xff]  ;;  %v103_v47 = vld [vmem:[#allocation6 + $0x108] sm:$0xff] }
  0x42   :  { %890 = vmatprep.subr.bf16.mxu1 %v889_v31  ;;  %v100_v46 = vld [vmem:[#allocation6 + $0xf0] sm:$0xff]  ;;  %v107_v48 = vld [vmem:[#allocation6 + $0x128] sm:$0xff]  ;;  %v105_v49 = vld [vmem:[#allocation6 + $0x118] sm:$0xff]  ;;  %v863_v51 = vpack.c.bf16 %v98_v43, %v94_v42 }
  0x43   :  { %v109_v50 = vld [vmem:[#allocation6 + $0x138] sm:$0xff]  ;;  %v895_v52 = vpack.c.bf16 %v100_v46, %v96_v45  ;;  %v865_v53 = vpack.c.bf16 %v107_v48, %v103_v47  ;;  %v102_v54 = vld [vmem:[#allocation6 + $0x100] sm:$0xff]  ;;  %v104_v56 = vld [vmem:[#allocation6 + $0x110] sm:$0xff] }
  0x44   :  { %860 = vmatpush1.bf16.msra.mxu0 %v859_v35  ;;  %v106_v55 = vld [vmem:[#allocation6 + $0x120] sm:$0xff]  ;;  %v897_v57 = vpack.c.bf16 %v109_v50, %v105_v49  ;;  %v108_v58 = vld [vmem:[#allocation6 + $0x130] sm:$0xff]  ;;  %v111_v59 = vld [vmem:[#allocation6 + $0x148] sm:$0xff] }
  0x45   :  { %892 = vmatpush1.bf16.msra.mxu1 %v891_v39  ;;  %862 = vmatprep.subr.bf16.mxu0 %v861_v40  ;;  %v115_v60 = vld [vmem:[#allocation6 + $0x168] sm:$0xff]  ;;  %v113_v61 = vld [vmem:[#allocation6 + $0x158] sm:$0xff]  ;;  %v867_v63 = vpack.c.bf16 %v106_v55, %v102_v54  ;;  %v899_v1 = vpack.c.bf16 %v108_v58, %v104_v56  ;;  %v110_v3 = vld [vmem:[#allocation6 + $0x140] sm:$0xff] }
  0x46   :  { %894 = vmatprep.subr.bf16.mxu1 %v893_v44  ;;  %v117_v62 = vld [vmem:[#allocation6 + $0x178] sm:$0xff]  ;;  %v869_v2 = vpack.c.bf16 %v115_v60, %v111_v59  ;;  %v114_v4 = vld [vmem:[#allocation6 + $0x160] sm:$0xff]  ;;  %v112_v5 = vld [vmem:[#allocation6 + $0x150] sm:$0xff] }
  0x47   :  { %v901_v6 = vpack.c.bf16 %v117_v62, %v113_v61  ;;  %v116_v7 = vld [vmem:[#allocation6 + $0x170] sm:$0xff]  ;;  %v119_v8 = vld [vmem:[#allocation6 + $0x188] sm:$0xff]  ;;  %v121_v10 = vld [vmem:[#allocation6 + $0x198] sm:$0xff]  ;;  %v871_v12 = vpack.c.bf16 %v114_v4, %v110_v3 }
  0x48   :  { %864 = vmatpush1.bf16.msra.mxu0 %v863_v51  ;;  %v123_v9 = vld [vmem:[#allocation6 + $0x1a8] sm:$0xff]  ;;  %v125_v11 = vld [vmem:[#allocation6 + $0x1b8] sm:$0xff]  ;;  %v903_v13 = vpack.c.bf16 %v116_v7, %v112_v5  ;;  %v118_v15 = vld [vmem:[#allocation6 + $0x180] sm:$0xff] }
  0x49   :  { %896 = vmatpush1.bf16.msra.mxu1 %v895_v52  ;;  %866 = vmatprep.subr.bf16.mxu0 %v865_v53  ;;  %v873_v14 = vpack.c.bf16 %v123_v9, %v119_v8  ;;  %v122_v16 = vld [vmem:[#allocation6 + $0x1a0] sm:$0xff]  ;;  %v120_v17 = vld [vmem:[#allocation6 + $0x190] sm:$0xff]  ;;  %v905_v18 = vpack.c.bf16 %v125_v11, %v121_v10  ;;  %v127_v20 = vld [vmem:[#allocation6 + $0x1c8] sm:$0xff] }
  0x4a   :  { %898 = vmatprep.subr.bf16.mxu1 %v897_v57  ;;  %v124_v19 = vld [vmem:[#allocation6 + $0x1b0] sm:$0xff]  ;;  %v131_v21 = vld [vmem:[#allocation6 + $0x1e8] sm:$0xff]  ;;  %v129_v22 = vld [vmem:[#allocation6 + $0x1d8] sm:$0xff]  ;;  %v875_v24 = vpack.c.bf16 %v122_v16, %v118_v15 }
  0x4b   :  { %v133_v23 = vld [vmem:[#allocation6 + $0x1f8] sm:$0xff]  ;;  %v907_v25 = vpack.c.bf16 %v124_v19, %v120_v17  ;;  %v877_v26 = vpack.c.bf16 %v131_v21, %v127_v20  ;;  %v126_v27 = vld [vmem:[#allocation6 + $0x1c0] sm:$0xff]  ;;  %v128_v30 = vld [vmem:[#allocation6 + $0x1d0] sm:$0xff] }
  0x4c   :  { %868 = vmatpush1.bf16.msra.mxu0 %v867_v63  ;;  %v130_v28 = vld [vmem:[#allocation6 + $0x1e0] sm:$0xff]  ;;  %v909_v29 = vpack.c.bf16 %v133_v23, %v129_v22  ;;  %v132_v31 = vld [vmem:[#allocation6 + $0x1f0] sm:$0xff]  ;;  %v69_v35 = vld [vmem:[#allocation3 + $0x8] sm:$0xff] }
  0x4d   :  { %900 = vmatpush1.bf16.msra.mxu1 %v899_v1  ;;  %870 = vmatprep.subr.bf16.mxu0 %v869_v2  ;;  %v879_v32 = vpack.c.bf16 %v130_v28, %v126_v27  ;;  %v911_v33 = vpack.c.bf16 %v132_v31, %v128_v30  ;;  %v68_v34 = vld [vmem:[#allocation3] sm:$0xff]  ;;  %v536_v36 = vld [vmem:[#allocation8 + $0x80] sm:$0xff]  ;;  %v537_v37 = vld [vmem:[#allocation8 + $0x88] sm:$0xff] }
  0x4e   :  { %902 = vmatprep.subr.bf16.mxu1 %v901_v6  ;;  %v568_v38 = vld [vmem:[#allocation8 + $0x180] sm:$0xff]  ;;  %v913_v39 = vpack.c.bf16 %v537_v37, %v536_v36  ;;  %v569_v40 = vld [vmem:[#allocation8 + $0x188] sm:$0xff]  ;;  %v538_v48 = vld [vmem:[#allocation8 + $0x90] sm:$0xff] }
  0x4f   :  { %v520_v41 = vld [vmem:[#allocation8] sm:$0xff]  ;;  %v521_v42 = vld [vmem:[#allocation8 + $0x8] sm:$0xff]  ;;  %v945_v43 = vpack.c.bf16 %v569_v40, %v568_v38  ;;  %v539_v49 = vld [vmem:[#allocation8 + $0x98] sm:$0xff] }
  0x50   :  { %872 = vmatpush1.bf16.msra.mxu0 %v871_v12  ;;  %v915_v44 = vpack.c.bf16 %v521_v42, %v520_v41  ;;  %v552_v45 = vld [vmem:[#allocation8 + $0x100] sm:$0xff]  ;;  %v553_v46 = vld [vmem:[#allocation8 + $0x108] sm:$0xff]  ;;  %v917_v50 = vpack.c.bf16 %v539_v49, %v538_v48  ;;  %v571_v51 = vld [vmem:[#allocation8 + $0x198] sm:$0xff] }
  0x51   :  { %904 = vmatpush1.bf16.msra.mxu1 %v903_v13  ;;  %874 = vmatprep.subr.bf16.mxu0 %v873_v14  ;;  %v947_v47 = vpack.c.bf16 %v553_v46, %v552_v45  ;;  %v522_v52 = vld [vmem:[#allocation8 + $0x10] sm:$0xff]  ;;  %v523_v53 = vld [vmem:[#allocation8 + $0x18] sm:$0xff]  ;;  %v540_v59 = vld [vmem:[#allocation8 + $0xa0] sm:$0xff] }
  0x52   :  { %906 = vmatprep.subr.bf16.mxu1 %v905_v18  ;;  %v919_v55 = vpack.c.bf16 %v523_v53, %v522_v52  ;;  %v554_v56 = vld [vmem:[#allocation8 + $0x110] sm:$0xff]  ;;  %v555_v57 = vld [vmem:[#allocation8 + $0x118] sm:$0xff]  ;;  %v541_v60 = vld [vmem:[#allocation8 + $0xa8] sm:$0xff] }
  0x53   :  { %v951_v58 = vpack.c.bf16 %v555_v57, %v554_v56  ;;  %v572_v61 = vld [vmem:[#allocation8 + $0x1a0] sm:$0xff]  ;;  %v921_v62 = vpack.c.bf16 %v541_v60, %v540_v59  ;;  %v573_v63 = vld [vmem:[#allocation8 + $0x1a8] sm:$0xff]  ;;  %v542_v8 = vld [vmem:[#allocation8 + $0xb0] sm:$0xff] }
  0x54   :  { %876 = vmatpush1.bf16.msra.mxu0 %v875_v24  ;;  %v524_v1 = vld [vmem:[#allocation8 + $0x20] sm:$0xff]  ;;  %v525_v2 = vld [vmem:[#allocation8 + $0x28] sm:$0xff]  ;;  %v953_v3 = vpack.c.bf16 %v573_v63, %v572_v61  ;;  %v543_v9 = vld [vmem:[#allocation8 + $0xb8] sm:$0xff] }
  0x55   :  { %908 = vmatpush1.bf16.msra.mxu1 %v907_v25  ;;  %878 = vmatprep.subr.bf16.mxu0 %v877_v26  ;;  %v923_v4 = vpack.c.bf16 %v525_v2, %v524_v1  ;;  %v556_v5 = vld [vmem:[#allocation8 + $0x120] sm:$0xff]  ;;  %v557_v6 = vld [vmem:[#allocation8 + $0x128] sm:$0xff]  ;;  %v574_v10 = vld [vmem:[#allocation8 + $0x1b0] sm:$0xff]  ;;  %v925_v11 = vpack.c.bf16 %v543_v9, %v542_v8 }
  0x56   :  { %910 = vmatprep.subr.bf16.mxu1 %v909_v29  ;;  %v955_v7 = vpack.c.bf16 %v557_v6, %v556_v5  ;;  %v575_v12 = vld [vmem:[#allocation8 + $0x1b8] sm:$0xff]  ;;  %v526_v13 = vld [vmem:[#allocation8 + $0x30] sm:$0xff]  ;;  %v544_v20 = vld [vmem:[#allocation8 + $0xc0] sm:$0xff] }
  0x57   :  { %v527_v14 = vld [vmem:[#allocation8 + $0x38] sm:$0xff]  ;;  %v957_v15 = vpack.c.bf16 %v575_v12, %v574_v10  ;;  %v558_v17 = vld [vmem:[#allocation8 + $0x130] sm:$0xff]  ;;  %v545_v21 = vld [vmem:[#allocation8 + $0xc8] sm:$0xff] }
  0x58   :  { %880 = vmatpush1.bf16.msra.mxu0 %v879_v32  ;;  %v927_v16 = vpack.c.bf16 %v527_v14, %v526_v13  ;;  %v559_v18 = vld [vmem:[#allocation8 + $0x138] sm:$0xff]  ;;  %v576_v22 = vld [vmem:[#allocation8 + $0x1c0] sm:$0xff]  ;;  %v929_v23 = vpack.c.bf16 %v545_v21, %v544_v20  ;;  %v577_v24 = vld [vmem:[#allocation8 + $0x1c8] sm:$0xff] }
  0x59   :  { %912 = vmatpush1.bf16.msra.mxu1 %v911_v33  ;;  %914 = vmatprep.subr.bf16.mxu0 %v913_v39  ;;  %v959_v19 = vpack.c.bf16 %v559_v18, %v558_v17  ;;  %v528_v25 = vld [vmem:[#allocation8 + $0x40] sm:$0xff]  ;;  %v529_v26 = vld [vmem:[#allocation8 + $0x48] sm:$0xff]  ;;  %v961_v27 = vpack.c.bf16 %v577_v24, %v576_v22  ;;  %v546_v32 = vld [vmem:[#allocation8 + $0xd0] sm:$0xff] }
  0x5a   :  { %946 = vmatprep.subr.bf16.mxu1 %v945_v43  ;;  %v931_v28 = vpack.c.bf16 %v529_v26, %v528_v25  ;;  %v560_v29 = vld [vmem:[#allocation8 + $0x140] sm:$0xff]  ;;  %v561_v30 = vld [vmem:[#allocation8 + $0x148] sm:$0xff]  ;;  %v547_v33 = vld [vmem:[#allocation8 + $0xd8] sm:$0xff] }
  0x5b   :  { %221 = vmatmul.mubr.f32.vlgmr.msra.gmra.mrb[0].mxu0 %v68_v34  ;;  %v963_v31 = vpack.c.bf16 %v561_v30, %v560_v29  ;;  %v579_v36 = vld [vmem:[#allocation8 + $0x1d8] sm:$0xff]  ;;  %v530_v37 = vld [vmem:[#allocation8 + $0x50] sm:$0xff]  ;;  %v549_v45 = vld [vmem:[#allocation8 + $0xe8] sm:$0xff] }
  0x5c   :  { %298 = vmatmul.mubr.f32.vlgmr.msra.gmra.mrb[0].mxu1 %v68_v34  ;;  %226 = vmatprep.mubr.f32.mxu0 %v1119_v0  ;;  %v578_v34 = vld [vmem:[#allocation8 + $0x1d0] sm:$0xff]  ;;  %v531_v38 = vld [vmem:[#allocation8 + $0x58] sm:$0xff]  ;;  %v580_v46 = vld [vmem:[#allocation8 + $0x1e0] sm:$0xff] }
  0x5d   :  { %303 = vmatprep.mubr.f32.mxu1 %v1119_v0  ;;  %916 = vmatpush3.bf16.msra.mxu0 %v915_v44  ;;  %v570_v0 = vld [vmem:[#allocation8 + $0x190] sm:$0xff]  ;;  %v965_v39 = vpack.c.bf16 %v579_v36, %v578_v34  ;;  %v935_v40 = vpack.c.bf16 %v531_v38, %v530_v37  ;;  %v563_v42 = vld [vmem:[#allocation8 + $0x158] sm:$0xff]  ;;  %v548_v44 = vld [vmem:[#allocation8 + $0xe0] sm:$0xff] }
  0x5e   :  { %948 = vmatpush3.bf16.msra.mxu1 %v947_v47  ;;  %v949_v54 = vpack.c.bf16 %v571_v51, %v570_v0  ;;  %918 = vmatprep.subr.bf16.mxu0 %v917_v50  ;;  %v562_v41 = vld [vmem:[#allocation8 + $0x150] sm:$0xff]  ;;  %v937_v47 = vpack.c.bf16 %v549_v45, %v548_v44  ;;  %v581_v48 = vld [vmem:[#allocation8 + $0x1e8] sm:$0xff]  ;;  %v532_v49 = vld [vmem:[#allocation8 + $0x60] sm:$0xff] }
  0x5f   :  { %227 = vmatmul.mubr.f32.gmra.mrb[2].mxu0 %v69_v35  ;;  %v967_v43 = vpack.c.bf16 %v563_v42, %v562_v41  ;;  %v533_v0 = vld [vmem:[#allocation8 + $0x68] sm:$0xff]  ;;  %v969_v50 = vpack.c.bf16 %v581_v48, %v580_v46  ;;  %v564_v52 = vld [vmem:[#allocation8 + $0x160] sm:$0xff]  ;;  %v551_v56 = vld [vmem:[#allocation8 + $0xf8] sm:$0xff] }
  0x60   :  { %304 = vmatmul.mubr.f32.gmra.mrb[2].mxu1 %v69_v35  ;;  %950 = vmatprep.subr.bf16.mxu1 %v949_v54  ;;  %v933_v35 = vpack.c.bf16 %v547_v33, %v546_v32  ;;  %v939_v51 = vpack.c.bf16 %v533_v0, %v532_v49  ;;  %v565_v53 = vld [vmem:[#allocation8 + $0x168] sm:$0xff]  ;;  %v582_v57 = vld [vmem:[#allocation8 + $0x1f0] sm:$0xff]  ;;  %v583_v59 = vld [vmem:[#allocation8 + $0x1f8] sm:$0xff] }
  0x61   :  { %920 = vmatpush3.bf16.msra.mxu0 %v919_v55  ;;  %v971_v54 = vpack.c.bf16 %v565_v53, %v564_v52  ;;  %v550_v55 = vld [vmem:[#allocation8 + $0xf0] sm:$0xff]  ;;  %v535_v61 = vld [vmem:[#allocation8 + $0x78] sm:$0xff] }
  0x62   :  { %952 = vmatpush3.bf16.msra.mxu1 %v951_v58  ;;  %922 = vmatprep.subr.bf16.mxu0 %v921_v62  ;;  %v941_v58 = vpack.c.bf16 %v551_v56, %v550_v55  ;;  %v534_v60 = vld [vmem:[#allocation8 + $0x70] sm:$0xff]  ;;  %v973_v62 = vpack.c.bf16 %v583_v59, %v582_v57  ;;  %v567_v2 = vld [vmem:[#allocation8 + $0x178] sm:$0xff] }
  0x63   :  { %954 = vmatprep.subr.bf16.mxu1 %v953_v3  ;;  %v943_v63 = vpack.c.bf16 %v535_v61, %v534_v60  ;;  %v566_v1 = vld [vmem:[#allocation8 + $0x170] sm:$0xff] }
  0x64   :  { %v975_v3 = vpack.c.bf16 %v567_v2, %v566_v1 }
  0x65   :  { %924 = vmatpush3.bf16.msra.mxu0 %v923_v4  ;;  %v136_v4 = vlaneseq }
  0x66   :  { %956 = vmatpush3.bf16.msra.mxu1 %v955_v7  ;;  %926 = vmatprep.subr.bf16.mxu0 %v925_v11  ;;  %v134_v7 = vld [vmem:[%s1351_s2] sm:$0xf] }
  0x67   :  { %958 = vmatprep.subr.bf16.mxu1 %v957_v15  ;;  %v137_v5 = vshrl.u32 %v136_v4, 7 }
  0x69   :  { %928 = vmatpush3.bf16.msra.mxu0 %v927_v16  ;;  %v138_v6 = vsub.s32 0, %v137_v5  ;;  %v146_v8 = vsub.s32 2, %v137_v5  ;;  %v142_v9 = vsub.s32 1, %v137_v5  ;;  %v150_v10 = vsub.s32 3, %v137_v5 }
  0x6a   :  { %960 = vmatpush3.bf16.msra.mxu1 %v959_v19  ;;  %930 = vmatprep.subr.bf16.mxu0 %v929_v23 }
  0x6b   :  { %962 = vmatprep.subr.bf16.mxu1 %v961_v27  ;;  %v139_v11 = vrot.slane %v134_v7, %v138_v6  ;;  %v147_v12 = vrot.slane %v134_v7, %v146_v8  ;;  %v143_v13 = vrot.slane %v134_v7, %v142_v9  ;;  %v151_v14 = vrot.slane %v134_v7, %v150_v10 }
  0x6d   :  { %932 = vmatpush3.bf16.msra.mxu0 %v931_v28 }
  0x6e   :  { %964 = vmatpush3.bf16.msra.mxu1 %v963_v31  ;;  %934 = vmatprep.subr.bf16.mxu0 %v933_v35 }
  0x6f   :  { %966 = vmatprep.subr.bf16.mxu1 %v965_v39 }
  0x71   :  { %936 = vmatpush3.bf16.msra.mxu0 %v935_v40 }
  0x72   :  { %968 = vmatpush3.bf16.msra.mxu1 %v967_v43  ;;  %938 = vmatprep.subr.bf16.mxu0 %v937_v47 }
  0x73   :  { %970 = vmatprep.subr.bf16.mxu1 %v969_v50 }
  0x75   :  { %940 = vmatpush3.bf16.msra.mxu0 %v939_v51 }
  0x76   :  { %972 = vmatpush3.bf16.msra.mxu1 %v971_v54  ;;  %942 = vmatprep.subr.bf16.mxu0 %v941_v58 }
  0x77   :  { %974 = vmatprep.subr.bf16.mxu1 %v973_v62 }
  0x79   :  { %944 = vmatpush3.bf16.msra.mxu0 %v943_v63 }
  0x7a   :  { %976 = vmatpush3.bf16.msra.mxu1 %v975_v3 }
 0x12e   :  { %v222_v15 = vpop.f32.mrb[0].mxu0 }
 0x12f   :  { %v1200_v16 = vadd.f32 %v222_v15, %v139_v11  ;;  %v299_v17 = vpop.f32.mrb[0].mxu1  ;;  %v224_v18 = vpop.f32.mrb[1].mxu0 }
 0x130   :  { %v1202_v19 = vadd.f32 %v299_v17, %v147_v12  ;;  %v1204_v20 = vadd.f32 %v224_v18, %v143_v13  ;;  %v301_v21 = vpop.f32.mrb[1].mxu1 }
 0x131   :  { %v1207_v22 = vmul.f32 0.70710677, %v1200_v16  ;;  %v1209_v23 = vadd.f32 %v301_v21, %v151_v14 }
 0x132   :  { %v1212_v24 = vmul.f32 0.70710677, %v1202_v19  ;;  %v1215_v25 = vmul.f32 0.70710677, %v1204_v20  ;;  %v228_v26 = vpop.f32.mrb[2].mxu0 }
 0x133   :  { %v318_v27 = vand.u32 2147483647, %v1207_v22  ;;  %v1219_v28 = vmul.f32 0.70710677, %v1209_v23  ;;  %v305_v29 = vpop.f32.mrb[2].mxu1  ;;  %v1224_v36 = vadd.f32 %v228_v26, %v139_v11  ;;  %v230_v39 = vpop.f32.mrb[3].mxu0 }
 0x134   :  { %v320_v30 = vand.u32 2147483647, %v1212_v24  ;;  %v319_v31 = vand.u32 2147483647, %v1215_v25  ;;  %v307_v40 = vpop.f32.mrb[3].mxu1  ;;  %v1229_v45 = vadd.f32 %v305_v29, %v147_v12  ;;  %v1231_v46 = vadd.f32 %v230_v39, %v143_v13 }
 0x135   :  { %v326_v32 = vmul.f32 0.3275911, %v318_v27  ;;  %v321_v33 = vand.u32 2147483647, %v1219_v28  ;;  %v1227_v43 = vmul.f32 0.70710677, %v1224_v36  ;;  %v1234_v48 = vadd.f32 %v307_v40, %v151_v14 }
 0x136   :  { %v328_v34 = vmul.f32 0.3275911, %v320_v30  ;;  %v327_v35 = vmul.f32 0.3275911, %v319_v31  ;;  %v1237_v49 = vmul.f32 0.70710677, %v1229_v45 }
 0x137   :  { %v334_v37 = vadd.f32 1.0, %v326_v32  ;;  %v329_v38 = vmul.f32 0.3275911, %v321_v33  ;;  %v322_v47 = vand.u32 2147483647, %v1227_v43  ;;  %v422_v50 = vsub.f32 0.0, %v318_v27 }
 0x138   :  { %v336_v41 = vadd.f32 1.0, %v328_v34  ;;  %v335_v42 = vadd.f32 1.0, %v327_v35  ;;  %v1240_v0 = vmul.f32 0.70710677, %v1231_v46  ;;  %v1243_v52 = vmul.f32 0.70710677, %v1234_v48 }
 0x139   :  { %986 = vrcp.f32 %v334_v37  ;;  %v337_v44 = vadd.f32 1.0, %v329_v38  ;;  %v330_v51 = vmul.f32 0.3275911, %v322_v47  ;;  %v424_v53 = vsub.f32 0.0, %v320_v30 }
 0x13a   :  { %988 = vrcp.f32 %v336_v41  ;;  %v324_v54 = vand.u32 2147483647, %v1237_v49  ;;  %v323_v55 = vand.u32 2147483647, %v1240_v0  ;;  %v423_v56 = vsub.f32 0.0, %v319_v31 }
 0x13b   :  { %990 = vrcp.f32 %v335_v42  ;;  %v338_v57 = vadd.f32 1.0, %v330_v51  ;;  %v425_v58 = vsub.f32 0.0, %v321_v33  ;;  %v430_v61 = vmul.f32 %v422_v50, %v318_v27 }
 0x13c   :  { %992 = vrcp.f32 %v337_v44  ;;  %v332_v59 = vmul.f32 0.3275911, %v324_v54  ;;  %v331_v60 = vmul.f32 0.3275911, %v323_v55  ;;  %v1248_v62 = vand.u32 2147483647, %v1243_v52 }
 0x13d   :  { %994 = vrcp.f32 %v338_v57  ;;  %v432_v1 = vmul.f32 %v424_v53, %v320_v30  ;;  %v426_v2 = vsub.f32 0.0, %v322_v47  ;;  %v431_v7 = vmul.f32 %v423_v56, %v319_v31 }
 0x13e   :  { %v340_v3 = vadd.f32 1.0, %v332_v59  ;;  %v339_v4 = vadd.f32 1.0, %v331_v60  ;;  %v333_v8 = vmul.f32 0.3275911, %v1248_v62  ;;  %v433_v10 = vmul.f32 %v425_v58, %v321_v33 }
 0x13f   :  { %v428_v11 = vsub.f32 0.0, %v324_v54  ;;  %v438_v13 = vmul.f32 1.442695, %v430_v61  ;;  %v442_v18 = vmul.f32 1.442695, %v432_v1  ;;  %v434_v21 = vmul.f32 %v426_v2, %v322_v47 }
 0x140   :  { %996 = vrcp.f32 %v340_v3  ;;  %v341_v14 = vadd.f32 1.0, %v333_v8  ;;  %v427_v26 = vsub.f32 0.0, %v323_v55  ;;  %v440_v30 = vmul.f32 1.442695, %v431_v7 }
 0x141   :  { %998 = vrcp.f32 %v339_v4  ;;  %v444_v33 = vmul.f32 1.442695, %v433_v10  ;;  %v436_v34 = vmul.f32 %v428_v11, %v324_v54  ;;  %v446_v40 = vmul.f32 1.442695, %v434_v21 }
 0x142   :  { %1000 = vrcp.f32 %v341_v14  ;;  %v435_v41 = vmul.f32 %v427_v26, %v323_v55  ;;  %v429_v55 = vsub.f32 0.0, %v1248_v62  ;;  %vm470_vm0 = vcmp.lt.f32.partialorder %v1207_v22, 0.0 }
 0x143   :  { %v1250_v63 = vpop.eup %986  ;;  %1002 = vpow2.f32 %v438_v13  ;;  %v450_v54 = vmul.f32 1.442695, %v436_v34  ;;  %vm472_vm1 = vcmp.lt.f32.partialorder %v1212_v24, 0.0  ;;  %vm471_vm2 = vcmp.lt.f32.partialorder %v1215_v25, 0.0 }
 0x144   :  { %v1252_v5 = vpop.eup %988  ;;  %v350_v6 = vmul.f32 1.0614054, %v1250_v63  ;;  %1004 = vpow2.f32 %v442_v18  ;;  %v448_v1 = vmul.f32 1.442695, %v435_v41  ;;  %vm473_vm3 = vcmp.lt.f32.partialorder %v1219_v28, 0.0 }
 0x145   :  { %v352_v9 = vmul.f32 1.0614054, %v1252_v5  ;;  %v1257_v15 = vpop.eup %990  ;;  %1006 = vpow2.f32 %v440_v30  ;;  %vm474_vm4 = vcmp.lt.f32.partialorder %v1227_v43, 0.0  ;;  %vm475_vm5 = vcmp.lt.f32.partialorder %v1240_v0, 0.0 }
 0x146   :  { %v358_v12 = vadd.f32 -1.4531521, %v350_v6  ;;  %v351_v29 = vmul.f32 1.0614054, %v1257_v15  ;;  %v1261_v31 = vpop.eup %992  ;;  %1008 = vpow2.f32 %v444_v33  ;;  %vm476_vm6 = vcmp.lt.f32.partialorder %v1237_v49, 0.0 }
 0x147   :  { %v360_v17 = vadd.f32 -1.4531521, %v352_v9  ;;  %v353_v38 = vmul.f32 1.0614054, %v1261_v31  ;;  %v1265_v42 = vpop.eup %994  ;;  %1010 = vpow2.f32 %v446_v40  ;;  %vm477_vm7 = vcmp.lt.f32.partialorder %v1243_v52, 0.0 }
 0x148   :  { %v366_v27 = vmul.f32 %v1250_v63, %v358_v12  ;;  %v359_v37 = vadd.f32 -1.4531521, %v351_v29  ;;  %v354_v53 = vmul.f32 1.0614054, %v1265_v42  ;;  %1012 = vpow2.f32 %v450_v54  ;;  %v772_v52 = vld [vmem:[%s1353_s4] ss:$0 sm:$0xff] }
 0x149   :  { %v368_v32 = vmul.f32 %v1252_v5, %v360_v17  ;;  %v361_v50 = vadd.f32 -1.4531521, %v353_v38  ;;  %1014 = vpow2.f32 %v448_v1 }
 0x14a   :  { %v374_v35 = vadd.f32 1.4214138, %v366_v27  ;;  %v367_v47 = vmul.f32 %v1257_v15, %v359_v37  ;;  %v1273_v59 = vpop.eup %996  ;;  %v362_v61 = vadd.f32 -1.4531521, %v354_v53 }
 0x14b   :  { %v376_v39 = vadd.f32 1.4214138, %v368_v32  ;;  %v369_v58 = vmul.f32 %v1261_v31, %v361_v50  ;;  %v1275_v2 = vpop.eup %998  ;;  %v356_v7 = vmul.f32 1.0614054, %v1273_v59 }
 0x14c   :  { %v382_v44 = vmul.f32 %v1250_v63, %v374_v35  ;;  %v375_v57 = vadd.f32 1.4214138, %v367_v47  ;;  %v370_v9 = vmul.f32 %v1265_v42, %v362_v61  ;;  %v355_v10 = vmul.f32 1.0614054, %v1275_v2  ;;  %v1284_v17 = vpop.eup %1000 }
 0x14d   :  { %v384_v51 = vmul.f32 %v1252_v5, %v376_v39  ;;  %v377_v6 = vadd.f32 1.4214138, %v369_v58  ;;  %v364_v14 = vadd.f32 -1.4531521, %v356_v7  ;;  %v1003_v27 = vpop.eup %1002  ;;  %v357_v39 = vmul.f32 1.0614054, %v1284_v17 }
 0x14e   :  { %v390_v56 = vadd.f32 -0.28449672, %v382_v44  ;;  %v383_v4 = vmul.f32 %v1257_v15, %v375_v57  ;;  %v378_v21 = vadd.f32 1.4214138, %v370_v9  ;;  %v363_v26 = vadd.f32 -1.4531521, %v355_v10  ;;  %v1005_v34 = vpop.eup %1004 }
 0x14f   :  { %v392_v60 = vadd.f32 -0.28449672, %v384_v51  ;;  %v385_v13 = vmul.f32 %v1261_v31, %v377_v6  ;;  %v372_v33 = vmul.f32 %v1273_v59, %v364_v14  ;;  %v1007_v40 = vpop.eup %1006  ;;  %v437_v6 = vmul.f32 %v429_v55, %v1248_v62 }
 0x150   :  { %v398_v3 = vmul.f32 %v1250_v63, %v390_v56  ;;  %v391_v12 = vadd.f32 -0.28449672, %v383_v4  ;;  %v386_v37 = vmul.f32 %v1265_v42, %v378_v21  ;;  %v371_v38 = vmul.f32 %v1275_v2, %v363_v26  ;;  %v1009_v50 = vpop.eup %1008 }
 0x151   :  { %v400_v8 = vmul.f32 %v1252_v5, %v392_v60  ;;  %v393_v32 = vadd.f32 -0.28449672, %v385_v13  ;;  %v380_v47 = vadd.f32 1.4214138, %v372_v33  ;;  %v365_v56 = vadd.f32 -1.4531521, %v357_v39  ;;  %v1011_v61 = vpop.eup %1010 }
 0x152   :  { %v406_v11 = vadd.f32 0.2548296, %v398_v3  ;;  %v399_v30 = vmul.f32 %v1257_v15, %v391_v12  ;;  %v394_v53 = vadd.f32 -0.28449672, %v386_v37  ;;  %v379_v54 = vadd.f32 1.4214138, %v371_v38 }
 0x153   :  { %v408_v18 = vadd.f32 0.2548296, %v400_v8  ;;  %v388_v60 = vmul.f32 %v1273_v59, %v380_v47  ;;  %v373_v14 = vmul.f32 %v1284_v17, %v365_v56 }
 0x154   :  { %v414_v29 = vmul.f32 %v1250_v63, %v406_v11  ;;  %v407_v44 = vadd.f32 0.2548296, %v399_v30  ;;  %v401_v63 = vmul.f32 %v1261_v31, %v393_v32  ;;  %v402_v3 = vmul.f32 %v1265_v42, %v394_v53  ;;  %v1013_v11 = vpop.eup %1012 }
 0x155   :  { %v416_v35 = vmul.f32 %v1252_v5, %v408_v18  ;;  %v387_v4 = vmul.f32 %v1275_v2, %v379_v54  ;;  %v396_v10 = vadd.f32 -0.28449672, %v388_v60  ;;  %v452_v30 = vmul.f32 1.442695, %v437_v6 }
 0x156   :  { %v454_v41 = vmul.f32 %v1003_v27, %v414_v29  ;;  %v415_v57 = vmul.f32 %v1257_v15, %v407_v44  ;;  %v409_v58 = vadd.f32 0.2548296, %v401_v63  ;;  %v410_v13 = vadd.f32 0.2548296, %v402_v3  ;;  %v1015_v29 = vpop.eup %1014 }
 0x157   :  { %v456_v51 = vmul.f32 %v1005_v34, %v416_v35  ;;  %v395_v15 = vadd.f32 -0.28449672, %v387_v4  ;;  %v404_v27 = vmul.f32 %v1273_v59, %v396_v10  ;;  %v381_v38 = vadd.f32 1.4214138, %v373_v14 }
 0x158   :  { %v462_v5 = vsub.f32 1.0, %v454_v41  ;;  %v455_v8 = vmul.f32 %v1007_v40, %v415_v57  ;;  %v417_v9 = vmul.f32 %v1261_v31, %v409_v58  ;;  %v418_v31 = vmul.f32 %v1265_v42, %v410_v13 }
 0x159   :  { %v464_v1 = vsub.f32 1.0, %v456_v51  ;;  %v403_v55 = vmul.f32 %v1275_v2, %v395_v15  ;;  %v412_v35 = vadd.f32 0.2548296, %v404_v27  ;;  %1016 = vpow2.f32 %v452_v30 }
 0x15a   :  { %v478_v7 = vsub.f32 0.0, %v462_v5  ;;  %v463_v21 = vsub.f32 1.0, %v455_v8  ;;  %v457_v26 = vmul.f32 %v1009_v50, %v417_v9  ;;  %v458_v22 = vmul.f32 %v1011_v61, %v418_v31 }
 0x15b   :  { %v480_v12 = vsub.f32 0.0, %v464_v1  ;;  %v411_v37 = vadd.f32 0.2548296, %v403_v55  ;;  %v420_v41 = vmul.f32 %v1273_v59, %v412_v35  ;;  %v389_v28 = vmul.f32 %v1284_v17, %v381_v38 }
 0x15c   :  { %v486_v18 = vsel %vm470_vm0, %v478_v7, %v462_v5  ;;  %v479_v33 = vsub.f32 0.0, %v463_v21  ;;  %v465_v34 = vsub.f32 1.0, %v457_v26  ;;  %v466_v44 = vsub.f32 1.0, %v458_v22 }
 0x15d   :  { %v488_v62 = vsel %vm472_vm1, %v480_v12, %v464_v1  ;;  %v494_v32 = vadd.f32 1.0, %v486_v18  ;;  %v419_v63 = vmul.f32 %v1275_v2, %v411_v37  ;;  %v460_v51 = vmul.f32 %v1013_v11, %v420_v41 }
 0x15e   :  { %v496_v39 = vadd.f32 1.0, %v488_v62  ;;  %v487_v40 = vsel %vm471_vm2, %v479_v33, %v463_v21  ;;  %v481_v24 = vsub.f32 0.0, %v465_v34  ;;  %v482_v56 = vsub.f32 0.0, %v466_v44 }
 0x15f   :  { %v495_v42 = vadd.f32 1.0, %v487_v40  ;;  %v502_v47 = vmul.f32 0.5, %v494_v32  ;;  %v459_v5 = vmul.f32 %v1015_v29, %v419_v63  ;;  %v468_v25 = vsub.f32 1.0, %v460_v51 }
 0x160   :  { %v489_v50 = vsel %vm473_vm3, %v481_v24, %v465_v34  ;;  %v504_v57 = vmul.f32 0.5, %v496_v39  ;;  %v397_v58 = vadd.f32 -0.28449672, %v389_v28  ;;  %v490_v61 = vsel %vm474_vm4, %v482_v56, %v466_v44 }
 0x161   :  { %v503_v53 = vmul.f32 0.5, %v495_v42  ;;  %v497_v54 = vadd.f32 1.0, %v489_v50  ;;  %v467_v2 = vsub.f32 1.0, %v459_v5  ;;  %v510_v1 = vmul.f32 %v502_v47, %v1200_v16 }
 0x162   :  { %v405_v3 = vmul.f32 %v1284_v17, %v397_v58  ;;  %v498_v6 = vadd.f32 1.0, %v490_v61  ;;  %v512_v8 = vmul.f32 %v504_v57, %v1202_v19  ;;  %v484_v9 = vsub.f32 0.0, %v468_v25 }
 0x163   :  { %v511_v59 = vmul.f32 %v503_v53, %v1204_v20  ;;  %v505_v60 = vmul.f32 0.5, %v497_v54  ;;  %v483_v7 = vsub.f32 0.0, %v467_v2  ;;  %v1017_v16 = vpop.eup %1016 }
 0x164   :  { %v413_v43 = vadd.f32 0.2548296, %v405_v3  ;;  %v506_v12 = vmul.f32 0.5, %v498_v6  ;;  %v492_v15 = vsel %vm476_vm6, %v484_v9, %v468_v25 }
 0x165   :  { %v513_v4 = vmul.f32 %v505_v60, %v1209_v23  ;;  %648 = vmatprep.mubr.f32.mxu0 %v511_v59  ;;  %v491_v20 = vsel %vm475_vm5, %v483_v7, %v467_v2  ;;  %v500_v18 = vadd.f32 1.0, %v492_v15 }
 0x166   :  { %649 = vmatmul.mubr.f32.vlgmr.msra.gmra.mrb[4].mxu0 %v510_v1  ;;  %v499_v10 = vadd.f32 1.0, %v491_v20  ;;  %v421_v11 = vmul.f32 %v1284_v17, %v413_v43  ;;  %v514_v0 = vmul.f32 %v506_v12, %v1224_v36 }
 0x167   :  { %723 = vmatprep.mubr.f32.mxu1 %v513_v4  ;;  %v508_v27 = vmul.f32 0.5, %v500_v18 }
 0x168   :  { %724 = vmatmul.mubr.f32.vlgmr.msra.gmra.mrb[4].mxu1 %v512_v8  ;;  %v507_v23 = vmul.f32 0.5, %v499_v10  ;;  %v461_v13 = vmul.f32 %v1017_v16, %v421_v11 }
 0x169   :  { %v516_v62 = vmul.f32 %v508_v27, %v1229_v45 }
 0x16a   :  { %v515_v19 = vmul.f32 %v507_v23, %v1231_v46  ;;  %v469_v14 = vsub.f32 1.0, %v461_v13 }
 0x16c   :  { %v485_v21 = vsub.f32 0.0, %v469_v14  ;;  %653 = vmatprep.mubr.f32.mxu0 %v515_v19 }
 0x16d   :  { %654 = vmatmul.mubr.f32.gmra.mrb[6].mxu0 %v514_v0 }
 0x16e   :  { %v493_v17 = vsel %vm477_vm7, %v485_v21, %v469_v14 }
 0x16f   :  { %v501_v26 = vadd.f32 1.0, %v493_v17 }
 0x171   :  { %v509_v29 = vmul.f32 0.5, %v501_v26 }
 0x173   :  { %v517_v49 = vmul.f32 %v509_v29, %v1234_v48 }
 0x175   :  { %728 = vmatprep.mubr.f32.mxu1 %v517_v49 }
 0x176   :  { %729 = vmatmul.mubr.f32.gmra.mrb[6].mxu1 %v516_v62 }
 0x239   :  { %v805_v46 = vpop.f32.mrb[4].mxu0 }
 0x23a   :  { %v806_v31 = vpop.f32.mrb[5].mxu0 }
 0x23b   :  { %v843_v55 = vpop.f32.mrb[4].mxu1  ;;  %v807_v36 = vadd.f32 %v806_v31, %v805_v46 }
 0x23c   :  { %v844_v30 = vpop.f32.mrb[5].mxu1 }
 0x23d   :  { %v845_v32 = vadd.f32 %v844_v30, %v843_v55 }
 0x23f   :  { %v726_v33 = vadd.f32 %v845_v32, %v807_v36 }
 0x240   :  { %v808_v35 = vpop.f32.mrb[6].mxu0 }
 0x241   :  { %v750_v34 = vadd.f32 %v772_v52, %v726_v33  ;;  %v809_v22 = vpop.f32.mrb[7].mxu0 }
 0x242   :  { %v810_v48 = vadd.f32 %v809_v22, %v808_v35 }
 0x243   :  { %752 = vst [vmem:[#allocation9] sm:$0xff] %v750_v34 }
 0x249   :  { %v846_v37 = vpop.f32.mrb[6].mxu1 }
 0x24a   :  { %v847_v45 = vpop.f32.mrb[7].mxu1 }
 0x24b   :  { %v848_v38 = vadd.f32 %v847_v45, %v846_v37 }
 0x24d   :  { %v731_v39 = vadd.f32 %v848_v38, %v810_v48 }
 0x24f   :  { %v751_v40 = vadd.f32 %v772_v52, %v731_v39 }
 0x251   :  { %753 = vst [vmem:[#allocation9 + $0x8] sm:$0xff] %v751_v40 }
 0x252   :  { %1095 = shalt.err (!%p1092_p0)
}
 0x253   :  { %s1096_s12 = scalar_lea.hbm %s1354_s5, 256 }
 0x254   :  { %p1097_p1 = scmp.ne.s32.totalorder %s1354_s5, %s1096_s12  ;;  %p1100_p2 = scmp.lt.u32.totalorder %s1096_s12, %s1354_s5 }
 0x256   :  { %p1102_p3 = pnand %p1100_p2, %p1097_p1 }
 0x258   :  { %1105 = shalt.err (!%p1102_p3)
}
 0x259   :  { %765 = dma.vmem_to_hbm [thread:$0]  %s760_s9, 256, %s1354_s5, [#allocation5], %s1116_s1, %s1116_s1, %s1117_s17  }
 0x25a   :  { %1110 = dma.done.wait [#allocation5], 256  }
 0x25b   :  { %1111 = vsyncadd [#allocation5], 4294967040 }
 0x25c   :  { %769 = vsyncpa [#allocation4], 1 }
 0x25d   :  { %770 = vsyncpa [#allocation7], 1 }
 0x25e   :  { %771 = vsyncpa [#allocation5], 1 }

</bundles_post_ra>
